<compile_context>
chip_gen: v7x
topology: tpu7x:2x2x1
jax: 0.10.0
libtpu: 0.0.40
codegen_flags: <defaults>
</compile_context>

<pallas_src>
import functools

import jax
import jax.numpy as jnp
from jax.experimental import pallas as pl
from jax.experimental.pallas import tpu as pltpu


def _attention_ref_kernel(r_ref, i_ref, keep_ref, msel_ref, w1_ref, b1_ref,
                          w2_ref, b2_ref, u_ref, *, scaling):
    TB = r_ref.shape[0]
    C = u_ref.shape[-1]
    inv = 1.0 / float(C - 1)
    hp = jax.lax.Precision.HIGHEST

    keep = keep_ref[...] != 0        # (1, CC) bool, True off the (ck==cs) diag
    msel = msel_ref[...]             # (CC, C)  0/1 group-indicator (sum over cs)
    w1t = w1_ref[...]                # (A, F)   torch Linear layout (out, in)
    b1 = b1_ref[...]                 # (A, 1)
    w2 = w2_ref[...]                 # (A, 1)
    b2 = b2_ref[...]                 # (1, 1)

    rows = []
    for bb in range(TB):             # TB is small (<=16): fully unrolled
        # Per-batch ref slices (never load the whole (TB, F, CC) tile).
        xr = jnp.where(keep, r_ref[bb], 0.0)          # (F, CC), exact masked_fill
        xi = jnp.where(keep, i_ref[bb], 0.0)

        # Off-diagonal channel sum as one tiny MXU matmul per real/imag part:
        # rs[f, ck] = sum_{cs != ck} psd_real[b, f, ck, cs]
        rs = jnp.dot(xr, msel, precision=hp, preferred_element_type=jnp.float32)
        im = jnp.dot(xi, msel, precision=hp, preferred_element_type=jnp.float32)
        feat = jnp.sqrt(rs * rs + im * im) * inv      # (F, C)

        # mlp_psd: (A, F) x (F, C) -> (A, C); both operands MXU-native, no transpose.
        h = jnp.tanh(
            jnp.dot(w1t, feat, precision=hp, preferred_element_type=jnp.float32)
            + b1)                                     # (A, C)

        # gvec (Linear(A -> 1)) on the VPU + sublane reduce.
        rows.append(jnp.sum(h * w2, axis=0, keepdims=True) + b2)   # (1, C)

    e_all = rows[0] if TB == 1 else jnp.concatenate(rows, axis=0)  # (TB, C)

    # softmax(scaling * e, axis=-1)
    s = scaling * e_all
    m = jnp.max(s, axis=-1, keepdims=True)
    p = jnp.exp(s - m)
    denom = jnp.sum(p, axis=-1, keepdims=True)
    u_ref[...] = (p / denom).astype(u_ref.dtype)


def _round_up(x, m):
    return ((x + m - 1) // m) * m


def attention_reference(psd_real, psd_imag, ilens, w1, b1, w2, b2,
                        scaling: float = 2.0, batch_tile=None):
    """Pallas version of AttentionReference.forward.

    psd_real, psd_imag: (B, F, C, C) float32 (real/imag parts of the PSD)
    ilens: (B,) int32 (returned untouched, as in espnet)
    w1: (att_dim, bidim=F) mlp_psd weight (torch Linear layout); b1: (att_dim,)
    w2: (att_dim,) gvec weight; b2: () gvec bias
    Returns: u (B, C) float32, ilens (B,)
    """
    B, Fdim, C, C2 = psd_real.shape
    assert C == C2, (C, C2)
    A = w1.shape[0]
    CC = C * C

    # Layout-preserving (free) reshape: merge the two channel axes onto lanes.
    # No transpose, no pad -> the PSD is read from HBM exactly once, by the kernel.
    r3 = psd_real.reshape(B, Fdim, CC)
    i3 = psd_imag.reshape(B, Fdim, CC)

    # Tiny constants: group-indicator matrix (CC, C) and off-diagonal keep mask.
    k = jnp.arange(CC, dtype=jnp.int32)
    msel = (k[:, None] // C == jnp.arange(C, dtype=jnp.int32)[None, :]
            ).astype(jnp.float32)                              # (CC, C)
    keep = ((k % (C + 1)) != 0).astype(jnp.int32).reshape(1, CC)  # diag lanes = ck*(C+1)

    # Batch tile: no padding pass, output block sublane-legal, >=2 grid steps
    # for B >= 16 (v7x dual TensorCore), bounded unroll / VMEM footprint.
    if batch_tile is not None:
        TB = max(1, min(int(batch_tile), B))
        if TB != B and TB % 8 != 0:
            TB = B if B <= 8 else max(8, (TB // 8) * 8)
    elif B <= 8:
        TB = B
    else:
        TB = min(16, max(8, 8 * ((-(-B // 2)) // 8)))
    nb = pl.cdiv(B, TB)   # ragged tail (if any) is handled by Pallas OOB clipping

    # Per-generation-safe VMEM budget (double-buffered PSD blocks + weights).
    in_block = TB * _round_up(Fdim, 8) * _round_up(CC, 128) * 4
    w_block = _round_up(A, 8) * _round_up(Fdim, 128) * 4
    need = 2 * 2 * in_block + 2 * w_block + (1 << 20)
    vmem_limit = int(min(48 << 20, max(32 << 20, 2 * need)))

    flops = (2 * B * Fdim * CC * C * 2      # two selection matmuls (real+imag)
             + 2 * B * A * Fdim * C         # mlp_psd
             + 2 * B * A * C)               # gvec
    transcendentals = B * (Fdim * C + A * C + C)           # sqrt + tanh + exp
    bytes_accessed = (2 * B * Fdim * CC + A * Fdim + 2 * A + CC * C + CC + 1
                      + B * C) * 4
    cost = pl.CostEstimate(flops=int(flops),
                           transcendentals=int(transcendentals),
                           bytes_accessed=int(bytes_accessed))

    kernel = functools.partial(_attention_ref_kernel, scaling=float(scaling))

    u = pl.pallas_call(
        kernel,
        out_shape=jax.ShapeDtypeStruct((B, C), jnp.float32),
        grid=(nb,),
        in_specs=[
            pl.BlockSpec((TB, Fdim, CC), lambda b: (b, 0, 0)),
            pl.BlockSpec((TB, Fdim, CC), lambda b: (b, 0, 0)),
            pl.BlockSpec((1, CC), lambda b: (0, 0)),
            pl.BlockSpec((CC, C), lambda b: (0, 0)),
            pl.BlockSpec((A, Fdim), lambda b: (0, 0)),
            pl.BlockSpec((A, 1), lambda b: (0, 0)),
            pl.BlockSpec((A, 1), lambda b: (0, 0)),
            pl.BlockSpec((1, 1), lambda b: (0, 0)),
        ],
        out_specs=pl.BlockSpec((TB, C), lambda b: (b, 0)),
        compiler_params=pltpu.CompilerParams(
            dimension_semantics=("parallel",),
            vmem_limit_bytes=vmem_limit),
        cost_estimate=cost,
    )(r3, i3, keep, msel, w1, b1.reshape(A, 1), w2.reshape(A, 1),
      b2.reshape(1, 1))

    # TODO(synk): ilens is unused by AttentionReference (no length masking of
    # the softmax) -- it is returned unchanged, matching the PyTorch module.
    return u, ilens


def _reference_jax(psd_real, psd_imag, w1, b1, w2, b2, scaling=2.0):
    """Pure-JAX reference mirroring the PyTorch forward exactly."""
    B, Fd, C, _ = psd_real.shape
    hp = jax.lax.Precision.HIGHEST
    eye = jnp.eye(C, dtype=bool)
    r = jnp.where(eye, 0.0, psd_real)
    i = jnp.where(eye, 0.0, psd_imag)
    pr = (r.sum(-1) / (C - 1)).transpose(0, 2, 1)   # (B, C, F)
    pi = (i.sum(-1) / (C - 1)).transpose(0, 2, 1)
    feat = jnp.sqrt(pr ** 2 + pi ** 2)
    mlp = jnp.einsum('bcf,af->bca', feat, w1, precision=hp) + b1
    e = jnp.einsum('bca,a->bc', jnp.tanh(mlp), w2, precision=hp) + b2
    return jax.nn.softmax(scaling * e, axis=-1)


if __name__ == "__main__":
    B, C = 2, 4          # batch, mic channels
    BIDIM = 64           # frequency bins (= Linear input dim "bidim")
    ATT_DIM = 32         # attention hidden dim

    key = jax.random.PRNGKey(0)
    k_r, k_i, k_w1, k_b1, k_w2, k_b2 = jax.random.split(key, 6)

    psd_real = jax.random.normal(k_r, (B, BIDIM, C, C), dtype=jnp.float32)
    psd_imag = jax.random.normal(k_i, (B, BIDIM, C, C), dtype=jnp.float32)
    ilens = jnp.array([BIDIM, BIDIM - 3], dtype=jnp.int32)

    # Parameters in torch Linear layout: mlp_psd.weight (att_dim, bidim), gvec (att_dim,).
    w1 = jax.random.normal(k_w1, (ATT_DIM, BIDIM), dtype=jnp.float32) * 0.1
    b1 = jax.random.normal(k_b1, (ATT_DIM,), dtype=jnp.float32) * 0.1
    w2 = jax.random.normal(k_w2, (ATT_DIM,), dtype=jnp.float32) * 0.1
    b2 = jax.random.normal(k_b2, (), dtype=jnp.float32) * 0.1

    u, out_ilens = attention_reference(psd_real, psd_imag, ilens,
                                       w1, b1, w2, b2, scaling=2.0)
    u = jax.block_until_ready(u)

    u_ref = _reference_jax(psd_real, psd_imag, w1, b1, w2, b2, scaling=2.0)
    assert u.shape == (B, C)
    assert out_ilens.shape == (B,)
    # Typical error with full-f32 MXU passes is <1e-5; small margin for
    # generation-dependent reduction ordering.
    assert jnp.allclose(u, u_ref, atol=1e-4, rtol=1e-3), (u, u_ref)
    assert jnp.allclose(jnp.sum(u, axis=-1), 1.0, atol=1e-5)

    print("KERNEL_OK")
</pallas_src>

<mosaic_0001>
module attributes {stable_mosaic.version = 11 : i64} {
  func.func @_attention_ref_kernel(%arg0: i32, %arg1: memref<2x64x16xf32, #tpu.memory_space<vmem>>, %arg2: memref<2x64x16xf32, #tpu.memory_space<vmem>>, %arg3: memref<1x16xi32, #tpu.memory_space<vmem>>, %arg4: memref<16x4xf32, #tpu.memory_space<vmem>>, %arg5: memref<32x64xf32, #tpu.memory_space<vmem>>, %arg6: memref<32x1xf32, #tpu.memory_space<vmem>>, %arg7: memref<32x1xf32, #tpu.memory_space<vmem>>, %arg8: memref<1x1xf32, #tpu.memory_space<vmem>>, %arg9: memref<2x4xf32, #tpu.memory_space<vmem>>) attributes {dimension_semantics = [#tpu.dimension_semantics<parallel>], iteration_bounds = array<i64: 1>, scalar_prefetch = 0 : i64, scratch_operands = 0 : i64, tpu.core_type = #tpu.core_type<tc>, window_params = [{transform_indices = @transform_0, window_bounds = array<i64: 2, 64, 16>}, {transform_indices = @transform_1, window_bounds = array<i64: 2, 64, 16>}, {pipeline_mode = #tpu.pipeline_mode<synchronous>, transform_indices = @transform_2, window_bounds = array<i64: 1, 16>}, {pipeline_mode = #tpu.pipeline_mode<synchronous>, transform_indices = @transform_3, window_bounds = array<i64: 16, 4>}, {pipeline_mode = #tpu.pipeline_mode<synchronous>, transform_indices = @transform_4, window_bounds = array<i64: 32, 64>}, {pipeline_mode = #tpu.pipeline_mode<synchronous>, transform_indices = @transform_5, window_bounds = array<i64: 32, 1>}, {pipeline_mode = #tpu.pipeline_mode<synchronous>, transform_indices = @transform_6, window_bounds = array<i64: 32, 1>}, {pipeline_mode = #tpu.pipeline_mode<synchronous>, transform_indices = @transform_7, window_bounds = array<i64: 1, 1>}, {transform_indices = @transform_8, window_bounds = array<i64: 2, 4>}]} {
    %c0 = arith.constant 0 : index
    %c0_0 = arith.constant 0 : index
    %0 = vector.load %arg3[%c0, %c0_0] : memref<1x16xi32, #tpu.memory_space<vmem>>, vector<1x16xi32>
    %c0_i32 = arith.constant 0 : i32
    %1 = vector.broadcast %c0_i32 : i32 to vector<1x16xi32>
    %2 = arith.cmpi ne, %0, %1 : vector<1x16xi32>
    %c0_1 = arith.constant 0 : index
    %c0_2 = arith.constant 0 : index
    %3 = vector.load %arg4[%c0_1, %c0_2] : memref<16x4xf32, #tpu.memory_space<vmem>>, vector<16x4xf32>
    %c0_3 = arith.constant 0 : index
    %c0_4 = arith.constant 0 : index
    %4 = vector.load %arg5[%c0_3, %c0_4] : memref<32x64xf32, #tpu.memory_space<vmem>>, vector<32x64xf32>
    %c0_5 = arith.constant 0 : index
    %c0_6 = arith.constant 0 : index
    %5 = vector.load %arg6[%c0_5, %c0_6] : memref<32x1xf32, #tpu.memory_space<vmem>>, vector<32x1xf32>
    %c0_7 = arith.constant 0 : index
    %c0_8 = arith.constant 0 : index
    %6 = vector.load %arg7[%c0_7, %c0_8] : memref<32x1xf32, #tpu.memory_space<vmem>>, vector<32x1xf32>
    %c0_9 = arith.constant 0 : index
    %c0_10 = arith.constant 0 : index
    %7 = vector.load %arg8[%c0_9, %c0_10] : memref<1x1xf32, #tpu.memory_space<vmem>>, vector<1x1xf32>
    %c0_11 = arith.constant 0 : index
    %c0_12 = arith.constant 0 : index
    %c0_13 = arith.constant 0 : index
    %8 = vector.load %arg1[%c0_11, %c0_12, %c0_13] : memref<2x64x16xf32, #tpu.memory_space<vmem>>, vector<1x64x16xf32>
    %9 = vector.shape_cast %8 : vector<1x64x16xf32> to vector<64x16xf32>
    %cst = arith.constant 0.000000e+00 : f32
    %10 = vector.shape_cast %2 : vector<1x16xi1> to vector<1x16xi1>
    %11 = vector.broadcast %10 : vector<1x16xi1> to vector<64x16xi1>
    %12 = vector.broadcast %cst : f32 to vector<64x16xf32>
    %13 = arith.select %11, %9, %12 : vector<64x16xi1>, vector<64x16xf32>
    %c0_14 = arith.constant 0 : index
    %c0_15 = arith.constant 0 : index
    %c0_16 = arith.constant 0 : index
    %14 = vector.load %arg2[%c0_14, %c0_15, %c0_16] : memref<2x64x16xf32, #tpu.memory_space<vmem>>, vector<1x64x16xf32>
    %15 = vector.shape_cast %14 : vector<1x64x16xf32> to vector<64x16xf32>
    %cst_17 = arith.constant 0.000000e+00 : f32
    %16 = vector.shape_cast %2 : vector<1x16xi1> to vector<1x16xi1>
    %17 = vector.broadcast %16 : vector<1x16xi1> to vector<64x16xi1>
    %18 = vector.broadcast %cst_17 : f32 to vector<64x16xf32>
    %19 = arith.select %17, %15, %18 : vector<64x16xi1>, vector<64x16xf32>
    %cst_18 = arith.constant dense<0.000000e+00> : vector<64x4xf32>
    %20 = tpu.matmul %13, %3, %cst_18 {dimension_numbers = #tpu.dot_dimension_numbers<[1], [0], [0], [1], [0, 0, 1, 1], [], []>, precision = #tpu.contract_precision<fp32>} : vector<64x16xf32>, vector<16x4xf32>, vector<64x4xf32> -> vector<64x4xf32>
    %cst_19 = arith.constant dense<0.000000e+00> : vector<64x4xf32>
    %21 = tpu.matmul %19, %3, %cst_19 {dimension_numbers = #tpu.dot_dimension_numbers<[1], [0], [0], [1], [0, 0, 1, 1], [], []>, precision = #tpu.contract_precision<fp32>} : vector<64x16xf32>, vector<16x4xf32>, vector<64x4xf32> -> vector<64x4xf32>
    %22 = arith.mulf %20, %20 : vector<64x4xf32>
    %23 = arith.mulf %21, %21 : vector<64x4xf32>
    %24 = arith.addf %22, %23 : vector<64x4xf32>
    %25 = math.sqrt %24 : vector<64x4xf32>
    %cst_20 = arith.constant 0.333333343 : f32
    %26 = vector.broadcast %cst_20 : f32 to vector<64x4xf32>
    %27 = arith.mulf %25, %26 : vector<64x4xf32>
    %cst_21 = arith.constant dense<0.000000e+00> : vector<32x4xf32>
    %28 = tpu.matmul %4, %27, %cst_21 {dimension_numbers = #tpu.dot_dimension_numbers<[1], [0], [0], [1], [0, 0, 1, 1], [], []>, precision = #tpu.contract_precision<fp32>} : vector<32x64xf32>, vector<64x4xf32>, vector<32x4xf32> -> vector<32x4xf32>
    %29 = vector.broadcast %5 : vector<32x1xf32> to vector<32x4xf32>
    %30 = arith.addf %28, %29 : vector<32x4xf32>
    %31 = math.tanh %30 : vector<32x4xf32>
    %32 = vector.broadcast %6 : vector<32x1xf32> to vector<32x4xf32>
    %33 = arith.mulf %31, %32 : vector<32x4xf32>
    %cst_22 = arith.constant dense<0.000000e+00> : vector<4xf32>
    %34 = vector.multi_reduction <add>, %33, %cst_22 [0] : vector<32x4xf32> to vector<4xf32>
    %35 = vector.shape_cast %34 : vector<4xf32> to vector<1x4xf32>
    %36 = vector.broadcast %7 : vector<1x1xf32> to vector<1x4xf32>
    %37 = arith.addf %35, %36 : vector<1x4xf32>
    %c1 = arith.constant 1 : index
    %c0_23 = arith.constant 0 : index
    %c0_24 = arith.constant 0 : index
    %38 = vector.load %arg1[%c1, %c0_23, %c0_24] : memref<2x64x16xf32, #tpu.memory_space<vmem>>, vector<1x64x16xf32>
    %39 = vector.shape_cast %38 : vector<1x64x16xf32> to vector<64x16xf32>
    %cst_25 = arith.constant 0.000000e+00 : f32
    %40 = vector.shape_cast %2 : vector<1x16xi1> to vector<1x16xi1>
    %41 = vector.broadcast %40 : vector<1x16xi1> to vector<64x16xi1>
    %42 = vector.broadcast %cst_25 : f32 to vector<64x16xf32>
    %43 = arith.select %41, %39, %42 : vector<64x16xi1>, vector<64x16xf32>
    %c1_26 = arith.constant 1 : index
    %c0_27 = arith.constant 0 : index
    %c0_28 = arith.constant 0 : index
    %44 = vector.load %arg2[%c1_26, %c0_27, %c0_28] : memref<2x64x16xf32, #tpu.memory_space<vmem>>, vector<1x64x16xf32>
    %45 = vector.shape_cast %44 : vector<1x64x16xf32> to vector<64x16xf32>
    %cst_29 = arith.constant 0.000000e+00 : f32
    %46 = vector.shape_cast %2 : vector<1x16xi1> to vector<1x16xi1>
    %47 = vector.broadcast %46 : vector<1x16xi1> to vector<64x16xi1>
    %48 = vector.broadcast %cst_29 : f32 to vector<64x16xf32>
    %49 = arith.select %47, %45, %48 : vector<64x16xi1>, vector<64x16xf32>
    %cst_30 = arith.constant dense<0.000000e+00> : vector<64x4xf32>
    %50 = tpu.matmul %43, %3, %cst_30 {dimension_numbers = #tpu.dot_dimension_numbers<[1], [0], [0], [1], [0, 0, 1, 1], [], []>, precision = #tpu.contract_precision<fp32>} : vector<64x16xf32>, vector<16x4xf32>, vector<64x4xf32> -> vector<64x4xf32>
    %cst_31 = arith.constant dense<0.000000e+00> : vector<64x4xf32>
    %51 = tpu.matmul %49, %3, %cst_31 {dimension_numbers = #tpu.dot_dimension_numbers<[1], [0], [0], [1], [0, 0, 1, 1], [], []>, precision = #tpu.contract_precision<fp32>} : vector<64x16xf32>, vector<16x4xf32>, vector<64x4xf32> -> vector<64x4xf32>
    %52 = arith.mulf %50, %50 : vector<64x4xf32>
    %53 = arith.mulf %51, %51 : vector<64x4xf32>
    %54 = arith.addf %52, %53 : vector<64x4xf32>
    %55 = math.sqrt %54 : vector<64x4xf32>
    %cst_32 = arith.constant 0.333333343 : f32
    %56 = vector.broadcast %cst_32 : f32 to vector<64x4xf32>
    %57 = arith.mulf %55, %56 : vector<64x4xf32>
    %cst_33 = arith.constant dense<0.000000e+00> : vector<32x4xf32>
    %58 = tpu.matmul %4, %57, %cst_33 {dimension_numbers = #tpu.dot_dimension_numbers<[1], [0], [0], [1], [0, 0, 1, 1], [], []>, precision = #tpu.contract_precision<fp32>} : vector<32x64xf32>, vector<64x4xf32>, vector<32x4xf32> -> vector<32x4xf32>
    %59 = vector.broadcast %5 : vector<32x1xf32> to vector<32x4xf32>
    %60 = arith.addf %58, %59 : vector<32x4xf32>
    %61 = math.tanh %60 : vector<32x4xf32>
    %62 = vector.broadcast %6 : vector<32x1xf32> to vector<32x4xf32>
    %63 = arith.mulf %61, %62 : vector<32x4xf32>
    %cst_34 = arith.constant dense<0.000000e+00> : vector<4xf32>
    %64 = vector.multi_reduction <add>, %63, %cst_34 [0] : vector<32x4xf32> to vector<4xf32>
    %65 = vector.shape_cast %64 : vector<4xf32> to vector<1x4xf32>
    %66 = vector.broadcast %7 : vector<1x1xf32> to vector<1x4xf32>
    %67 = arith.addf %65, %66 : vector<1x4xf32>
    %68 = tpu.concatenate %37, %67 in 0 : vector<1x4xf32>, vector<1x4xf32> -> vector<2x4xf32>
    %cst_35 = arith.constant 2.000000e+00 : f32
    %69 = vector.broadcast %cst_35 : f32 to vector<2x4xf32>
    %70 = arith.mulf %69, %68 : vector<2x4xf32>
    %cst_36 = arith.constant dense<0xFF800000> : vector<2xf32>
    %71 = vector.multi_reduction <maximumf>, %70, %cst_36 [1] : vector<2x4xf32> to vector<2xf32>
    %72 = vector.shape_cast %71 : vector<2xf32> to vector<2x1xf32>
    %73 = vector.broadcast %72 : vector<2x1xf32> to vector<2x4xf32>
    %74 = arith.subf %70, %73 : vector<2x4xf32>
    %75 = math.exp %74 : vector<2x4xf32>
    %cst_37 = arith.constant dense<0.000000e+00> : vector<2xf32>
    %76 = vector.multi_reduction <add>, %75, %cst_37 [1] : vector<2x4xf32> to vector<2xf32>
    %77 = vector.shape_cast %76 : vector<2xf32> to vector<2x1xf32>
    %78 = vector.broadcast %77 : vector<2x1xf32> to vector<2x4xf32>
    %79 = arith.divf %75, %78 : vector<2x4xf32>
    %c0_38 = arith.constant 0 : index
    %c0_39 = arith.constant 0 : index
    %80 = vector.load %arg9[%c0_38, %c0_39] : memref<2x4xf32, #tpu.memory_space<vmem>>, vector<2x4xf32>
    tpu.vector_store %arg9[%c0_38, %c0_39], %79 {strides = array<i32>} : memref<2x4xf32, #tpu.memory_space<vmem>>, vector<2x4xf32>,
    return
  }
  func.func @transform_0(%arg0: i32) -> (i32, i32, i32) {
    %c0_i32 = arith.constant 0 : i32
    %c0_i32_0 = arith.constant 0 : i32
    %c0_i32_1 = arith.constant 0 : i32
    return %arg0, %c0_i32, %c0_i32_0 : i32, i32, i32
  }
  func.func @transform_1(%arg0: i32) -> (i32, i32, i32) {
    %c0_i32 = arith.constant 0 : i32
    %c0_i32_0 = arith.constant 0 : i32
    %c0_i32_1 = arith.constant 0 : i32
    return %arg0, %c0_i32, %c0_i32_0 : i32, i32, i32
  }
  func.func @transform_2(%arg0: i32) -> (i32, i32) {
    %c0_i32 = arith.constant 0 : i32
    %c0_i32_0 = arith.constant 0 : i32
    %c0_i32_1 = arith.constant 0 : i32
    return %c0_i32, %c0_i32_0 : i32, i32
  }
  func.func @transform_3(%arg0: i32) -> (i32, i32) {
    %c0_i32 = arith.constant 0 : i32
    %c0_i32_0 = arith.constant 0 : i32
    %c0_i32_1 = arith.constant 0 : i32
    return %c0_i32, %c0_i32_0 : i32, i32
  }
  func.func @transform_4(%arg0: i32) -> (i32, i32) {
    %c0_i32 = arith.constant 0 : i32
    %c0_i32_0 = arith.constant 0 : i32
    %c0_i32_1 = arith.constant 0 : i32
    return %c0_i32, %c0_i32_0 : i32, i32
  }
  func.func @transform_5(%arg0: i32) -> (i32, i32) {
    %c0_i32 = arith.constant 0 : i32
    %c0_i32_0 = arith.constant 0 : i32
    %c0_i32_1 = arith.constant 0 : i32
    return %c0_i32, %c0_i32_0 : i32, i32
  }
  func.func @transform_6(%arg0: i32) -> (i32, i32) {
    %c0_i32 = arith.constant 0 : i32
    %c0_i32_0 = arith.constant 0 : i32
    %c0_i32_1 = arith.constant 0 : i32
    return %c0_i32, %c0_i32_0 : i32, i32
  }
  func.func @transform_7(%arg0: i32) -> (i32, i32) {
    %c0_i32 = arith.constant 0 : i32
    %c0_i32_0 = arith.constant 0 : i32
    %c0_i32_1 = arith.constant 0 : i32
    return %c0_i32, %c0_i32_0 : i32, i32
  }
  func.func @transform_8(%arg0: i32) -> (i32, i32) {
    %c0_i32 = arith.constant 0 : i32
    %c0_i32_0 = arith.constant 0 : i32
    return %arg0, %c0_i32 : i32, i32
  }
}

</mosaic_0001>

<bundles_post_ra>
// kernel: tpu_custom_call.1
= control target key start
LH: loop header
LB: loop body
LE: loop exit
PB: predicated region body
PF: predicated region fallthrough
CT: control target
= control target key end

     0   :  { %s7728_s0 = inlined_call_operand.vmem [shape: f32[2,64,16], index: 0, kind: input, shape index: {}]   ;;  %s7729_s1 = inlined_call_operand.vmem [shape: f32[2,64,16], index: 1, kind: input, shape index: {}]   ;;  %s7730_s2 = inlined_call_operand.vmem [shape: s32[1,16], index: 2, kind: input, shape index: {}]   ;;  %s7731_s3 = inlined_call_operand.vmem [shape: f32[16,4], index: 3, kind: input, shape index: {}]   ;;  %s7732_s4 = inlined_call_operand.vmem [shape: f32[32,64], index: 4, kind: input, shape index: {}]   ;;  %s7733_s5 = inlined_call_operand.vmem [shape: f32[32,1], index: 5, kind: input, shape index: {}]   ;;  %s7734_s6 = inlined_call_operand.vmem [shape: f32[32,1], index: 6, kind: input, shape index: {}]   ;;  %s7735_s7 = inlined_call_operand.<no memory space> [shape: f32[1,1], index: 7, kind: input, shape index: {}]   ;;  %s7736_s8 = inlined_call_operand.hbm [shape: f32[2,4], index: 8, kind: output, shape index: {}]  }
   0x1   :  { %v13_v0 = vstv %s7735_s7 }
   0x2   :  { %14 = vst [vmem:[#allocation2] sm:$0x1] %v13_v0 }
   0x3   :  { %v34_v1 = vld [vmem:[%s7731_s3] sm:$0xff]  ;;  %v35_v2 = vld [vmem:[%s7731_s3 + $0x8] sm:$0xff]  ;;  %v58_v4 = vlaneseq  ;;  %v6527_v7 = vmov 0  }
   0x4   :  { %v32_v3 = vld [vmem:[%s7730_s2] sm:$0x1]  ;;  %v113_v5 = vand.u32 4294901760, %v34_v1  ;;  %v116_v6 = vand.u32 4294901760, %v35_v2  ;;  %6449 = vset.pattern.permute.xlu0 %v6527_v7  ;;  %6450 = vset.pattern.permute.xlu1 %v6527_v7  ;;  %v50_v19 = vld [vmem:[%s7728_s0 + $0x8] sm:$0xff] }
   0x5   :  { %vm33_vm0 = vcmp.ne.s32.totalorder %v32_v3, 0  ;;  %v6586_v8 = vshrl.u32 %v58_v4, 7  ;;  %v49_v14 = vld [vmem:[%s7728_s0] sm:$0xff] }
   0x6   :  { %v6588_v9 = vpack.c.bf16 %v116_v6, %v113_v5  ;;  %v57_v10 = vsel %vm33_vm0, 1, %v6527_v7  ;;  %v6590_v11 = vsub.f32 %v34_v1, %v113_v5  ;;  %v6592_v12 = vsub.f32 %v35_v2, %v116_v6  ;;  %v71_v18 = vld [vmem:[%s7729_s1] sm:$0xff] }
   0x7   :  { %v7737_v13 = vsub.s32 0, %v6586_v8 }
   0x8   :  { %5952 = vmatprep.subr.bf16.mxu0 %v6588_v9  ;;  %5976 = vmatprep.subr.bf16.mxu1 %v6588_v9  ;;  %v262_v15 = vand.u32 4294901760, %v6590_v11  ;;  %v269_v16 = vand.u32 4294901760, %v6592_v12 }
   0x9   :  { %5954 = vmatpush3.bf16.msra.mxu0 %v6588_v9  ;;  %5978 = vmatpush3.bf16.msra.mxu1 %v6588_v9  ;;  %v6606_v17 = vrot.slane %v57_v10, %v7737_v13 }
   0xa   :  { %15 = vsyncpa [#allocation4], 0  ;;  %vm87_vm1 = vcmask 130048   ;;  %v263_v20 = vsub.f32 %v6590_v11, %v262_v15  ;;  %v270_v21 = vsub.f32 %v6592_v12, %v269_v16  ;;  %v72_v22 = vld [vmem:[%s7729_s1 + $0x8] sm:$0xff]  ;;  %v6626_v23 = vpack.c.bf16 %v6592_v12, %v6590_v11  ;;  %v51_v28 = vld [vmem:[%s7728_s0 + $0x10] sm:$0xff] }
   0xb   :  { %vm62_vm2 = vcmp.eq.s32.totalorder %v6606_v17, 1  ;;  %v73_v29 = vld [vmem:[%s7729_s1 + $0x10] sm:$0xff]  ;;  %v52_v38 = vld [vmem:[%s7728_s0 + $0x18] sm:$0xff]  ;;  %v53_v4 = vld [vmem:[%s7728_s0 + $0x20] sm:$0xff]  ;;  %vm1764_vm3 = vcmask 523264  }
   0xc   :  { %v63_v24 = vsel %vm62_vm2, %v49_v14, 0.0  ;;  %v79_v25 = vsel %vm62_vm2, %v71_v18, 0.0  ;;  %v64_v26 = vsel %vm62_vm2, %v50_v19, 0.0  ;;  %v264_v27 = vand.u32 4294901760, %v263_v20  ;;  %v74_v39 = vld [vmem:[%s7729_s1 + $0x18] sm:$0xff]  ;;  %v75_v5 = vld [vmem:[%s7729_s1 + $0x20] sm:$0xff] }
   0xd   :  { %v89_v30 = vsel %vm87_vm1, %v63_v24, 0  ;;  %v873_v31 = vsel %vm87_vm1, %v79_v25, 0  ;;  %v92_v32 = vsel %vm87_vm1, %v64_v26, 0  ;;  %v271_v33 = vand.u32 4294901760, %v270_v21  ;;  %v54_v6 = vld [vmem:[%s7728_s0 + $0x28] sm:$0xff] }
   0xe   :  { %v6643_v34 = vand.u32 4294901760, %v89_v30  ;;  %v6645_v35 = vand.u32 4294901760, %v873_v31  ;;  %v6647_v36 = vand.u32 4294901760, %v92_v32  ;;  %v80_v37 = vsel %vm62_vm2, %v72_v22, 0.0  ;;  %v76_v24 = vld [vmem:[%s7729_s1 + $0x28] sm:$0xff] }
   0xf   :  { %v6657_v40 = vpack.c.bf16 %v271_v33, %v264_v27  ;;  %v876_v41 = vsel %vm87_vm1, %v80_v37, 0  ;;  %v65_v42 = vsel %vm62_vm2, %v51_v28, 0.0  ;;  %v81_v43 = vsel %vm62_vm2, %v73_v29, 0.0 }
  0x10   :  { %v6665_v44 = vsub.f32 %v89_v30, %v6643_v34  ;;  %v6668_v45 = vsub.f32 %v873_v31, %v6645_v35  ;;  %v6671_v46 = vsub.f32 %v92_v32, %v6647_v36  ;;  %v6673_v47 = vand.u32 4294901760, %v876_v41 }
  0x11   :  { %5956 = vmatprep.subr.bf16.mxu0 %v6657_v40  ;;  %5980 = vmatprep.subr.bf16.mxu1 %v6657_v40  ;;  %v95_v48 = vsel %vm87_vm1, %v65_v42, 0  ;;  %v879_v49 = vsel %vm87_vm1, %v81_v43, 0  ;;  %v66_v50 = vsel %vm62_vm2, %v52_v38, 0.0  ;;  %v82_v51 = vsel %vm62_vm2, %v74_v39, 0.0 }
  0x12   :  { %v181_v52 = vand.u32 4294901760, %v6665_v44  ;;  %v965_v53 = vand.u32 4294901760, %v6668_v45  ;;  %v191_v54 = vand.u32 4294901760, %v6671_v46  ;;  %v6687_v55 = vsub.f32 %v876_v41, %v6673_v47  ;;  %v55_v41 = vld [vmem:[%s7728_s0 + $0x30] sm:$0xff] }
  0x13   :  { %v6689_v56 = vand.u32 4294901760, %v95_v48  ;;  %v6691_v57 = vand.u32 4294901760, %v879_v49  ;;  %v98_v58 = vsel %vm87_vm1, %v66_v50, 0  ;;  %v882_v59 = vsel %vm87_vm1, %v82_v51, 0 }
  0x14   :  { %v182_v60 = vsub.f32 %v6665_v44, %v181_v52  ;;  %v966_v61 = vsub.f32 %v6668_v45, %v965_v53  ;;  %v192_v62 = vsub.f32 %v6671_v46, %v191_v54  ;;  %v975_v63 = vand.u32 4294901760, %v6687_v55 }
  0x15   :  { %v6706_v0 = vsub.f32 %v95_v48, %v6689_v56  ;;  %v6709_v1 = vsub.f32 %v879_v49, %v6691_v57  ;;  %v6711_v2 = vand.u32 4294901760, %v98_v58  ;;  %v6713_v3 = vand.u32 4294901760, %v882_v59 }
  0x16   :  { %v183_v7 = vand.u32 4294901760, %v182_v60  ;;  %v967_v10 = vand.u32 4294901760, %v966_v61  ;;  %v193_v14 = vand.u32 4294901760, %v192_v62  ;;  %v976_v18 = vsub.f32 %v6687_v55, %v975_v63  ;;  %v77_v60 = vld [vmem:[%s7729_s1 + $0x30] sm:$0xff]  ;;  %v56_v61 = vld [vmem:[%s7728_s0 + $0x38] sm:$0xff] }
  0x17   :  { %v201_v19 = vand.u32 4294901760, %v6706_v0  ;;  %v985_v20 = vand.u32 4294901760, %v6709_v1  ;;  %v6730_v21 = vsub.f32 %v98_v58, %v6711_v2  ;;  %v6733_v22 = vsub.f32 %v882_v59, %v6713_v3 }
  0x18   :  { %5307 = vmatprep.mubr.f32.mxu0 %v183_v7  ;;  %5403 = vmatprep.mubr.f32.mxu1 %v967_v10  ;;  %v977_v25 = vand.u32 4294901760, %v976_v18  ;;  %v67_v26 = vsel %vm62_vm2, %v53_v4, 0.0  ;;  %v83_v27 = vsel %vm62_vm2, %v75_v5, 0.0  ;;  %v68_v28 = vsel %vm62_vm2, %v54_v6, 0.0 }
  0x19   :  { %5308 = vmatmul.mubr.f32.vlgmr.msra.gmra.mrb[0].mxu0 %v193_v14  ;;  %v202_v29 = vsub.f32 %v6706_v0, %v201_v19  ;;  %v986_v30 = vsub.f32 %v6709_v1, %v985_v20  ;;  %v211_v31 = vand.u32 4294901760, %v6730_v21  ;;  %v995_v32 = vand.u32 4294901760, %v6733_v22 }
  0x1a   :  { %5404 = vmatmul.mubr.f32.vlgmr.msra.gmra.mrb[0].mxu1 %v977_v25  ;;  %5958 = vmatpush3.bf16.msra.mxu0 %v6657_v40  ;;  %v101_v33 = vsel %vm87_vm1, %v67_v26, 0  ;;  %v885_v37 = vsel %vm87_vm1, %v83_v27, 0  ;;  %v104_v38 = vsel %vm87_vm1, %v68_v28, 0  ;;  %v84_v39 = vsel %vm62_vm2, %v76_v24, 0.0 }
  0x1b   :  { %5982 = vmatpush3.bf16.msra.mxu1 %v6657_v40  ;;  %v203_v42 = vand.u32 4294901760, %v202_v29  ;;  %v987_v43 = vand.u32 4294901760, %v986_v30  ;;  %v212_v48 = vsub.f32 %v6730_v21, %v211_v31  ;;  %v996_v49 = vsub.f32 %v6733_v22, %v995_v32  ;;  %5960 = vmatprep.subr.bf16.mxu0 %v6626_v23 }
  0x1c   :  { %v6769_v50 = vand.u32 4294901760, %v101_v33  ;;  %v6771_v51 = vand.u32 4294901760, %v885_v37  ;;  %v6773_v58 = vand.u32 4294901760, %v104_v38  ;;  %v888_v59 = vsel %vm87_vm1, %v84_v39, 0  ;;  %5984 = vmatprep.subr.bf16.mxu1 %v6626_v23 }
  0x1d   :  { %5310 = vmatprep.mubr.f32.mxu0 %v203_v42  ;;  %5406 = vmatprep.mubr.f32.mxu1 %v987_v43  ;;  %v213_v62 = vand.u32 4294901760, %v212_v48  ;;  %v997_v4 = vand.u32 4294901760, %v996_v49  ;;  %v6783_v5 = vand.u32 4294901760, %v888_v59  ;;  %v69_v6 = vsel %vm62_vm2, %v55_v41, 0.0 }
  0x1e   :  { %v6788_v7 = vsub.f32 %v101_v33, %v6769_v50  ;;  %v6791_v10 = vsub.f32 %v885_v37, %v6771_v51  ;;  %v6794_v14 = vsub.f32 %v104_v38, %v6773_v58  ;;  %v107_v18 = vsel %vm87_vm1, %v69_v6, 0  ;;  %v78_v37 = vld [vmem:[%s7729_s1 + $0x38] sm:$0xff] }
  0x1f   :  { %5311 = vmatmul.mubr.f32.gmra.mrb[2].mxu0 %v213_v62  ;;  %5407 = vmatmul.mubr.f32.gmra.mrb[2].mxu1 %v997_v4  ;;  %v6798_v24 = vsub.f32 %v888_v59, %v6783_v5  ;;  %v6800_v25 = vand.u32 4294901760, %v107_v18  ;;  %v85_v26 = vsel %vm62_vm2, %v77_v60, 0.0  ;;  %v70_v27 = vsel %vm62_vm2, %v56_v61, 0.0 }
  0x20   :  { %v221_v28 = vand.u32 4294901760, %v6788_v7  ;;  %v7738_v29 = vand.u32 4294901760, %v6791_v10  ;;  %v7740_v30 = vand.u32 4294901760, %v6794_v14  ;;  %v891_v33 = vsel %vm87_vm1, %v85_v26, 0 }
  0x21   :  { %v7739_v38 = vand.u32 4294901760, %v6798_v24  ;;  %v6815_v39 = vsub.f32 %v107_v18, %v6800_v25  ;;  %v6817_v41 = vand.u32 4294901760, %v891_v33  ;;  %v110_v42 = vsel %vm87_vm1, %v70_v27, 0 }
  0x22   :  { %v222_v43 = vsub.f32 %v6788_v7, %v221_v28  ;;  %v1006_v48 = vsub.f32 %v6791_v10, %v7738_v29  ;;  %v232_v49 = vsub.f32 %v6794_v14, %v7740_v30  ;;  %v6829_v59 = vand.u32 4294901760, %v110_v42 }
  0x23   :  { %v1016_v60 = vsub.f32 %v6798_v24, %v7739_v38  ;;  %v241_v61 = vand.u32 4294901760, %v6815_v39  ;;  %v6836_v62 = vsub.f32 %v891_v33, %v6817_v41  ;;  %v86_v4 = vsel %vm62_vm2, %v78_v37, 0.0 }
  0x24   :  { %v223_v6 = vand.u32 4294901760, %v222_v43  ;;  %v1007_v18 = vand.u32 4294901760, %v1006_v48  ;;  %v233_v26 = vand.u32 4294901760, %v232_v49  ;;  %v6841_v27 = vsub.f32 %v110_v42, %v6829_v59 }
  0x25   :  { %v1017_v13 = vand.u32 4294901760, %v1016_v60  ;;  %v242_v29 = vsub.f32 %v6815_v39, %v241_v61  ;;  %v1025_v38 = vand.u32 4294901760, %v6836_v62  ;;  %v894_v30 = vsel %vm87_vm1, %v86_v4, 0 }
  0x26   :  { %5313 = vmatprep.mubr.f32.mxu0 %v223_v6  ;;  %5409 = vmatprep.mubr.f32.mxu1 %v1007_v18  ;;  %v251_v33 = vand.u32 4294901760, %v6841_v27  ;;  %v6849_v37 = vand.u32 4294901760, %v894_v30  ;;  %v7741_v11 = vand.u32 4294901760, %v6794_v14  ;;  %v7742_v12 = vand.u32 4294901760, %v6791_v10 }
  0x27   :  { %5314 = vmatmul.mubr.f32.gmra.mrb[4].mxu0 %v233_v26  ;;  %5410 = vmatmul.mubr.f32.gmra.mrb[4].mxu1 %v1017_v13  ;;  %v243_v43 = vand.u32 4294901760, %v242_v29  ;;  %v1026_v42 = vsub.f32 %v6836_v62, %v1025_v38 }
  0x28   :  { %v252_v48 = vsub.f32 %v6841_v27, %v251_v33  ;;  %v6858_v49 = vsub.f32 %v894_v30, %v6849_v37  ;;  %v6888_v30 = vpack.c.bf16 %v269_v16, %v262_v15  ;;  %v7743_v15 = vand.u32 4294901760, %v6798_v24  ;;  %v36_v16 = vld [vmem:[%s7732_s4] sm:$0xff] }
  0x29   :  { %5316 = vmatprep.mubr.f32.mxu0 %v243_v43  ;;  %v1027_v60 = vand.u32 4294901760, %v1026_v42  ;;  %v4909_v43 = vld [vmem:[%s7728_s0 + $0x70] sm:$0xff] }
  0x2a   :  { %v253_v4 = vand.u32 4294901760, %v252_v48  ;;  %v1035_v6 = vand.u32 4294901760, %v6858_v49 }
  0x2b   :  { %5412 = vmatprep.mubr.f32.mxu1 %v1027_v60  ;;  %v4910_v60 = vld [vmem:[%s7728_s0 + $0x78] sm:$0xff] }
  0x2c   :  { %5317 = vmatmul.mubr.f32.gmra.mrb[6].mxu0 %v253_v4  ;;  %v1036_v13 = vsub.f32 %v6858_v49, %v1035_v6 }
  0x2d   :  { %5323 = vmatprep.mubr.f32.mxu0 %v6643_v34 }
  0x2e   :  { %v1037_v29 = vand.u32 4294901760, %v1036_v13  ;;  %v2511_v13 = vsel %vm62_vm2, %v4910_v60, 0.0 }
  0x30   :  { %5413 = vmatmul.mubr.f32.gmra.mrb[6].mxu1 %v1037_v29  ;;  %5324 = vmatmul.mubr.f32.vlgmr.msra.gmra.mrb[0].mxu0 %v6647_v36 }
  0x31   :  { %5419 = vmatprep.mubr.f32.mxu1 %v6645_v35  ;;  %5962 = vmatpush3.bf16.msra.mxu0 %v6626_v23 }
  0x32   :  { %5326 = vmatprep.mubr.f32.mxu0 %v6689_v56  ;;  %5964 = vmatprep.subr.bf16.mxu0 %v6588_v9 }
  0x34   :  { %5420 = vmatmul.mubr.f32.vlgmr.msra.gmra.mrb[0].mxu1 %v6673_v47  ;;  %5327 = vmatmul.mubr.f32.gmra.mrb[2].mxu0 %v6711_v2 }
  0x35   :  { %5986 = vmatpush3.bf16.msra.mxu1 %v6626_v23  ;;  %5422 = vmatprep.mubr.f32.mxu1 %v6691_v57 }
  0x36   :  { %5329 = vmatprep.mubr.f32.mxu0 %v6769_v50  ;;  %5988 = vmatprep.subr.bf16.mxu1 %v6588_v9 }
  0x38   :  { %5423 = vmatmul.mubr.f32.gmra.mrb[2].mxu1 %v6713_v3  ;;  %5330 = vmatmul.mubr.f32.gmra.mrb[4].mxu0 %v6773_v58 }
  0x39   :  { %5425 = vmatprep.mubr.f32.mxu1 %v6771_v51  ;;  %5332 = vmatprep.mubr.f32.mxu0 %v6800_v25 }
  0x3c   :  { %5426 = vmatmul.mubr.f32.gmra.mrb[4].mxu1 %v6783_v5  ;;  %5333 = vmatmul.mubr.f32.gmra.mrb[6].mxu0 %v6829_v59 }
  0x3d   :  { %5428 = vmatprep.mubr.f32.mxu1 %v6817_v41  ;;  %5339 = vmatprep.mubr.f32.mxu0 %v6665_v44 }
  0x40   :  { %5429 = vmatmul.mubr.f32.gmra.mrb[6].mxu1 %v6849_v37  ;;  %5340 = vmatmul.mubr.f32.vlgmr.msra.gmra.mrb[0].mxu0 %v6671_v46  ;;  %v4903_v46 = vld [vmem:[%s7728_s0 + $0x40] sm:$0xff] }
  0x41   :  { %5435 = vmatprep.mubr.f32.mxu1 %v6668_v45  ;;  %5966 = vmatpush3.bf16.msra.mxu0 %v6588_v9 }
  0x42   :  { %5342 = vmatprep.mubr.f32.mxu0 %v6706_v0  ;;  %5968 = vmatprep.subr.bf16.mxu0 %v6888_v30  ;;  %v4905_v0 = vld [vmem:[%s7728_s0 + $0x50] sm:$0xff] }
  0x44   :  { %5436 = vmatmul.mubr.f32.vlgmr.msra.gmra.mrb[0].mxu1 %v6687_v55  ;;  %5343 = vmatmul.mubr.f32.gmra.mrb[2].mxu0 %v6730_v21 }
  0x45   :  { %5990 = vmatpush3.bf16.msra.mxu1 %v6588_v9  ;;  %5438 = vmatprep.mubr.f32.mxu1 %v6709_v1 }
  0x46   :  { %5345 = vmatprep.mubr.f32.mxu0 %v6788_v7  ;;  %5992 = vmatprep.subr.bf16.mxu1 %v6888_v30 }
  0x48   :  { %5439 = vmatmul.mubr.f32.gmra.mrb[2].mxu1 %v6733_v22  ;;  %5346 = vmatmul.mubr.f32.gmra.mrb[4].mxu0 %v6794_v14 }
  0x49   :  { %5441 = vmatprep.mubr.f32.mxu1 %v6791_v10  ;;  %5348 = vmatprep.mubr.f32.mxu0 %v6815_v39 }
  0x4c   :  { %5442 = vmatmul.mubr.f32.gmra.mrb[4].mxu1 %v6798_v24  ;;  %5349 = vmatmul.mubr.f32.gmra.mrb[6].mxu0 %v6841_v27 }
  0x4d   :  { %5444 = vmatprep.mubr.f32.mxu1 %v6836_v62  ;;  %5355 = vmatprep.mubr.f32.mxu0 %v181_v52  ;;  %v4904_v52 = vld [vmem:[%s7728_s0 + $0x48] sm:$0xff] }
  0x4e   :  { %v2505_v55 = vsel %vm62_vm2, %v4904_v52, 0.0 }
  0x50   :  { %5445 = vmatmul.mubr.f32.gmra.mrb[6].mxu1 %v6858_v49  ;;  %5356 = vmatmul.mubr.f32.vlgmr.msra.gmra.mrb[0].mxu0 %v191_v54  ;;  %v2510_v49 = vsel %vm62_vm2, %v4909_v43, 0.0 }
  0x51   :  { %5451 = vmatprep.mubr.f32.mxu1 %v965_v53  ;;  %5970 = vmatpush3.bf16.msra.mxu0 %v6888_v30 }
  0x52   :  { %5358 = vmatprep.mubr.f32.mxu0 %v201_v19  ;;  %5972 = vmatprep.subr.bf16.mxu0 %v6588_v9 }
  0x54   :  { %5452 = vmatmul.mubr.f32.vlgmr.msra.gmra.mrb[0].mxu1 %v975_v63  ;;  %5359 = vmatmul.mubr.f32.gmra.mrb[2].mxu0 %v211_v31 }
  0x55   :  { %5994 = vmatpush3.bf16.msra.mxu1 %v6888_v30  ;;  %5454 = vmatprep.mubr.f32.mxu1 %v985_v20 }
  0x56   :  { %5361 = vmatprep.mubr.f32.mxu0 %v221_v28  ;;  %5996 = vmatprep.subr.bf16.mxu1 %v6588_v9 }
  0x58   :  { %5455 = vmatmul.mubr.f32.gmra.mrb[2].mxu1 %v995_v32  ;;  %5362 = vmatmul.mubr.f32.gmra.mrb[4].mxu0 %v7741_v11 }
  0x59   :  { %5457 = vmatprep.mubr.f32.mxu1 %v7742_v12  ;;  %5364 = vmatprep.mubr.f32.mxu0 %v241_v61  ;;  %v2551_v12 = vsel %vm87_vm1, %v2511_v13, 0 }
  0x5c   :  { %5458 = vmatmul.mubr.f32.gmra.mrb[4].mxu1 %v7743_v15  ;;  %5365 = vmatmul.mubr.f32.gmra.mrb[6].mxu0 %v251_v33 }
  0x5d   :  { %5460 = vmatprep.mubr.f32.mxu1 %v1025_v38  ;;  %5371 = vmatprep.mubr.f32.mxu0 %v6643_v34 }
  0x60   :  { %5461 = vmatmul.mubr.f32.gmra.mrb[6].mxu1 %v1035_v6  ;;  %5372 = vmatmul.mubr.f32.vlgmr.msra.gmra.mrb[0].mxu0 %v6647_v36  ;;  %v2548_v6 = vsel %vm87_vm1, %v2510_v49, 0 }
  0x61   :  { %5467 = vmatprep.mubr.f32.mxu1 %v6645_v35  ;;  %5974 = vmatpush3.bf16.msra.mxu0 %v6588_v9  ;;  %v7091_v11 = vand.u32 4294901760, %v2548_v6 }
  0x62   :  { %5374 = vmatprep.mubr.f32.mxu0 %v6689_v56 }
  0x64   :  { %5468 = vmatmul.mubr.f32.vlgmr.msra.gmra.mrb[0].mxu1 %v6673_v47  ;;  %5375 = vmatmul.mubr.f32.gmra.mrb[2].mxu0 %v6711_v2 }
  0x65   :  { %5998 = vmatpush3.bf16.msra.mxu1 %v6588_v9  ;;  %5470 = vmatprep.mubr.f32.mxu1 %v6691_v57 }
  0x66   :  { %5377 = vmatprep.mubr.f32.mxu0 %v6769_v50  ;;  %6096 = vmatprep.subr.bf16.mxu1 %v6588_v9 }
  0x68   :  { %5471 = vmatmul.mubr.f32.gmra.mrb[2].mxu1 %v6713_v3  ;;  %5378 = vmatmul.mubr.f32.gmra.mrb[4].mxu0 %v6773_v58 }
  0x69   :  { %5473 = vmatprep.mubr.f32.mxu1 %v6771_v51  ;;  %5380 = vmatprep.mubr.f32.mxu0 %v6800_v25 }
  0x6c   :  { %5474 = vmatmul.mubr.f32.gmra.mrb[4].mxu1 %v6783_v5  ;;  %5381 = vmatmul.mubr.f32.gmra.mrb[6].mxu0 %v6829_v59 }
  0x6d   :  { %5476 = vmatprep.mubr.f32.mxu1 %v6817_v41  ;;  %5387 = vmatprep.mubr.f32.mxu0 %v6643_v34  ;;  %v1766_v34 = vsel %vm1764_vm3, %v36_v16, 0  ;;  %v7094_v16 = vand.u32 4294901760, %v2551_v12 }
  0x70   :  { %5477 = vmatmul.mubr.f32.gmra.mrb[6].mxu1 %v6849_v37  ;;  %5388 = vmatmul.mubr.f32.vlgmr.msra.gmra.mrb[0].mxu0 %v6647_v36 }
  0x71   :  { %5483 = vmatprep.mubr.f32.mxu1 %v6645_v35  ;;  %5390 = vmatprep.mubr.f32.mxu0 %v6689_v56  ;;  %v6987_v35 = vand.u32 4294901760, %v1766_v34 }
  0x73   :  { %v6990_v36 = vsub.f32 %v1766_v34, %v6987_v35 }
  0x74   :  { %5484 = vmatmul.mubr.f32.vlgmr.msra.gmra.mrb[0].mxu1 %v6673_v47  ;;  %5391 = vmatmul.mubr.f32.gmra.mrb[2].mxu0 %v6711_v2  ;;  %v2504_v47 = vsel %vm62_vm2, %v4903_v46, 0.0  ;;  %v2506_v2 = vsel %vm62_vm2, %v4905_v0, 0.0 }
  0x75   :  { %5486 = vmatprep.mubr.f32.mxu1 %v6691_v57  ;;  %5393 = vmatprep.mubr.f32.mxu0 %v6769_v50  ;;  %v6993_v44 = vand.u32 4294901760, %v6990_v36  ;;  %v2530_v54 = vsel %vm87_vm1, %v2504_v47, 0  ;;  %v2533_v57 = vsel %vm87_vm1, %v2505_v55, 0  ;;  %v2536_v20 = vsel %vm87_vm1, %v2506_v2, 0 }
  0x76   :  { %6098 = vmatpush3.bf16.msra.mxu1 %v6588_v9  ;;  %v7010_v56 = vand.u32 4294901760, %v2530_v54  ;;  %v7014_v63 = vand.u32 4294901760, %v2533_v57  ;;  %v7034_v31 = vand.u32 4294901760, %v2536_v20  ;;  %v2691_v47 = vsub.f32 %v2551_v12, %v7094_v16 }
  0x77   :  { %6100 = vmatprep.subr.bf16.mxu1 %v6657_v40  ;;  %v1853_v45 = vsub.f32 %v6990_v36, %v6993_v44 }
  0x78   :  { %5487 = vmatmul.mubr.f32.gmra.mrb[2].mxu1 %v6713_v3  ;;  %5394 = vmatmul.mubr.f32.gmra.mrb[4].mxu0 %v6773_v58  ;;  %v7020_v1 = vsub.f32 %v2530_v54, %v7010_v56  ;;  %v4906_v3 = vld [vmem:[%s7728_s0 + $0x58] sm:$0xff]  ;;  %v7028_v19 = vsub.f32 %v2533_v57, %v7014_v63  ;;  %v2692_v57 = vand.u32 4294901760, %v2691_v47 }
  0x79   :  { %5489 = vmatprep.mubr.f32.mxu1 %v6771_v51  ;;  %5396 = vmatprep.mubr.f32.mxu0 %v6800_v25  ;;  %v7005_v53 = vand.u32 4294901760, %v1853_v45  ;;  %v2507_v21 = vsel %vm62_vm2, %v4906_v3, 0.0  ;;  %v4907_v25 = vld [vmem:[%s7728_s0 + $0x60] sm:$0xff]  ;;  %v2681_v45 = vsub.f32 %v2548_v6, %v7091_v11 }
  0x7a   :  { %v2622_v22 = vand.u32 4294901760, %v7020_v1  ;;  %v2539_v32 = vsel %vm87_vm1, %v2507_v21, 0  ;;  %v2632_v50 = vand.u32 4294901760, %v7028_v19  ;;  %v2508_v39 = vsel %vm62_vm2, %v4907_v25, 0.0 }
  0x7b   :  { %v7038_v51 = vand.u32 4294901760, %v2539_v32  ;;  %v2542_v61 = vsel %vm87_vm1, %v2508_v39, 0  ;;  %v2682_v54 = vand.u32 4294901760, %v2681_v45  ;;  %v2693_v2 = vsub.f32 %v2691_v47, %v2692_v57 }
  0x7c   :  { %5490 = vmatmul.mubr.f32.gmra.mrb[4].mxu1 %v6783_v5  ;;  %5397 = vmatmul.mubr.f32.gmra.mrb[6].mxu0 %v6829_v59  ;;  %v2623_v58 = vsub.f32 %v7020_v1, %v2622_v22  ;;  %v7044_v5 = vsub.f32 %v2536_v20, %v7034_v31  ;;  %v2633_v7 = vsub.f32 %v7028_v19, %v2632_v50  ;;  %v7071_v26 = vand.u32 4294901760, %v2542_v61 }
  0x7d   :  { %5492 = vmatprep.mubr.f32.mxu1 %v6817_v41  ;;  %5511 = vmatprep.mubr.f32.mxu0 %v7005_v53  ;;  %v7050_v10 = vsub.f32 %v2539_v32, %v7038_v51  ;;  %v4908_v41 = vld [vmem:[%s7728_s0 + $0x68] sm:$0xff]  ;;  %v2683_v0 = vsub.f32 %v2681_v45, %v2682_v54  ;;  %v2694_v20 = vand.u32 4294901760, %v2693_v2 }
  0x7e   :  { %v2624_v14 = vand.u32 4294901760, %v2623_v58  ;;  %v2642_v24 = vand.u32 4294901760, %v7044_v5  ;;  %v2634_v28 = vand.u32 4294901760, %v2633_v7  ;;  %v2509_v62 = vsel %vm62_vm2, %v4908_v41, 0.0 }
  0x7f   :  { %v2652_v38 = vand.u32 4294901760, %v7050_v10  ;;  %v2545_v27 = vsel %vm87_vm1, %v2509_v62, 0  ;;  %v2661_v48 = vsub.f32 %v2542_v61, %v7071_v26  ;;  %v2684_v3 = vand.u32 4294901760, %v2683_v0 }
  0x80   :  { %5493 = vmatmul.mubr.f32.gmra.mrb[6].mxu1 %v6849_v37  ;;  %v2643_v59 = vsub.f32 %v7044_v5, %v2642_v24  ;;  %v7074_v37 = vand.u32 4294901760, %v2545_v27 }
  0x81   :  { %5631 = vmatprep.mubr.f32.mxu1 %v2624_v14  ;;  %v2653_v18 = vsub.f32 %v7050_v10, %v2652_v38  ;;  %v2662_v29 = vand.u32 4294901760, %v2661_v48 }
  0x82   :  { %v2644_v33 = vand.u32 4294901760, %v2643_v59  ;;  %v2671_v4 = vsub.f32 %v2545_v27, %v7074_v37 }
  0x83   :  { %v2654_v42 = vand.u32 4294901760, %v2653_v18  ;;  %v2663_v34 = vsub.f32 %v2661_v48, %v2662_v29 }
  0x84   :  { %5632 = vmatmul.mubr.f32.vlgmr.msra.gmra.mrb[8].mxu1 %v2634_v28  ;;  %v2672_v15 = vand.u32 4294901760, %v2671_v4 }
  0x85   :  { %6102 = vmatpush3.bf16.msra.mxu1 %v6657_v40  ;;  %5634 = vmatprep.mubr.f32.mxu1 %v2644_v33  ;;  %v2664_v52 = vand.u32 4294901760, %v2663_v34 }
  0x86   :  { %6104 = vmatprep.subr.bf16.mxu1 %v6626_v23  ;;  %v2673_v46 = vsub.f32 %v2671_v4, %v2672_v15 }
  0x88   :  { %5635 = vmatmul.mubr.f32.gmra.mrb[10].mxu1 %v2654_v42  ;;  %v2674_v55 = vand.u32 4294901760, %v2673_v46 }
  0x89   :  { %5637 = vmatprep.mubr.f32.mxu1 %v2664_v52 }
  0x8c   :  { %5638 = vmatmul.mubr.f32.gmra.mrb[12].mxu1 %v2674_v55 }
  0x8d   :  { %5640 = vmatprep.mubr.f32.mxu1 %v2684_v3 }
  0x90   :  { %5641 = vmatmul.mubr.f32.gmra.mrb[14].mxu1 %v2694_v20 }
  0x91   :  { %5647 = vmatprep.mubr.f32.mxu1 %v7010_v56 }
  0x94   :  { %5648 = vmatmul.mubr.f32.vlgmr.msra.gmra.mrb[8].mxu1 %v7014_v63 }
  0x95   :  { %5650 = vmatprep.mubr.f32.mxu1 %v7034_v31  ;;  %6106 = vmatpush3.bf16.msra.mxu1 %v6626_v23 }
  0x96   :  { %6108 = vmatprep.subr.bf16.mxu1 %v6588_v9 }
  0x98   :  { %5651 = vmatmul.mubr.f32.gmra.mrb[10].mxu1 %v7038_v51 }
  0x99   :  { %5653 = vmatprep.mubr.f32.mxu1 %v7071_v26 }
  0x9c   :  { %5654 = vmatmul.mubr.f32.gmra.mrb[12].mxu1 %v7074_v37 }
  0x9d   :  { %5656 = vmatprep.mubr.f32.mxu1 %v7091_v11 }
  0xa0   :  { %5657 = vmatmul.mubr.f32.gmra.mrb[14].mxu1 %v7094_v16 }
  0xa1   :  { %5663 = vmatprep.mubr.f32.mxu1 %v7020_v1  ;;  %v37_v1 = vld [vmem:[%s7732_s4 + $0x8] sm:$0xff] }
  0xa2   :  { %v1769_v21 = vsel %vm1764_vm3, %v37_v1, 0 }
  0xa4   :  { %5664 = vmatmul.mubr.f32.vlgmr.msra.gmra.mrb[8].mxu1 %v7028_v19  ;;  %v38_v19 = vld [vmem:[%s7732_s4 + $0x10] sm:$0xff] }
  0xa5   :  { %5666 = vmatprep.mubr.f32.mxu1 %v7044_v5  ;;  %6110 = vmatpush3.bf16.msra.mxu1 %v6588_v9  ;;  %v1772_v32 = vsel %vm1764_vm3, %v38_v19, 0  ;;  %v7139_v5 = vand.u32 4294901760, %v1769_v21 }
  0xa6   :  { %6112 = vmatprep.subr.bf16.mxu1 %v6888_v30 }
  0xa7   :  { %v7147_v61 = vsub.f32 %v1769_v21, %v7139_v5 }
  0xa8   :  { %5667 = vmatmul.mubr.f32.gmra.mrb[10].mxu1 %v7050_v10  ;;  %v7141_v10 = vand.u32 4294901760, %v1772_v32 }
  0xa9   :  { %5669 = vmatprep.mubr.f32.mxu1 %v2661_v48  ;;  %v7163_v6 = vand.u32 4294901760, %v7147_v61 }
  0xaa   :  { %v7154_v27 = vsub.f32 %v1772_v32, %v7141_v10 }
  0xab   :  { %v1863_v3 = vsub.f32 %v7147_v61, %v7163_v6 }
  0xac   :  { %5670 = vmatmul.mubr.f32.gmra.mrb[12].mxu1 %v2671_v4 }
  0xad   :  { %5672 = vmatprep.mubr.f32.mxu1 %v2681_v45 }
  0xb0   :  { %5673 = vmatmul.mubr.f32.gmra.mrb[14].mxu1 %v2691_v47 }
  0xb1   :  { %5679 = vmatprep.mubr.f32.mxu1 %v2622_v22 }
  0xb4   :  { %5680 = vmatmul.mubr.f32.vlgmr.msra.gmra.mrb[8].mxu1 %v2632_v50  ;;  %v39_v50 = vld [vmem:[%s7732_s4 + $0x18] sm:$0xff] }
  0xb5   :  { %5682 = vmatprep.mubr.f32.mxu1 %v2642_v24  ;;  %6114 = vmatpush3.bf16.msra.mxu1 %v6888_v30  ;;  %v1775_v14 = vsel %vm1764_vm3, %v39_v50, 0 }
  0xb6   :  { %6116 = vmatprep.subr.bf16.mxu1 %v6588_v9  ;;  %v7149_v62 = vand.u32 4294901760, %v1775_v14 }
  0xb8   :  { %5683 = vmatmul.mubr.f32.gmra.mrb[10].mxu1 %v2652_v38  ;;  %v7166_v13 = vsub.f32 %v1775_v14, %v7149_v62  ;;  %v7192_v14 = vand.u32 4294901760, %v1863_v3 }
  0xb9   :  { %5685 = vmatprep.mubr.f32.mxu1 %v2662_v29 }
  0xba   :  { %v7180_v20 = vand.u32 4294901760, %v7166_v13 }
  0xbc   :  { %5686 = vmatmul.mubr.f32.gmra.mrb[12].mxu1 %v2672_v15  ;;  %v7169_v15 = vand.u32 4294901760, %v7154_v27 }
  0xbd   :  { %5688 = vmatprep.mubr.f32.mxu1 %v2682_v54 }
  0xbe   :  { %v1873_v1 = vsub.f32 %v7154_v27, %v7169_v15 }
  0xc0   :  { %5689 = vmatmul.mubr.f32.gmra.mrb[14].mxu1 %v2692_v57 }
  0xc1   :  { %5695 = vmatprep.mubr.f32.mxu1 %v7010_v56 }
  0xc4   :  { %5696 = vmatmul.mubr.f32.vlgmr.msra.gmra.mrb[8].mxu1 %v7014_v63 }
  0xc5   :  { %5698 = vmatprep.mubr.f32.mxu1 %v7034_v31  ;;  %6118 = vmatpush3.bf16.msra.mxu1 %v6588_v9 }
  0xc8   :  { %5699 = vmatmul.mubr.f32.gmra.mrb[10].mxu1 %v7038_v51 }
  0xc9   :  { %5701 = vmatprep.mubr.f32.mxu1 %v7071_v26 }
  0xcc   :  { %5702 = vmatmul.mubr.f32.gmra.mrb[12].mxu1 %v7074_v37 }
  0xcd   :  { %5704 = vmatprep.mubr.f32.mxu1 %v7091_v11 }
  0xd0   :  { %5705 = vmatmul.mubr.f32.gmra.mrb[14].mxu1 %v7094_v16 }
  0xd1   :  { %5711 = vmatprep.mubr.f32.mxu1 %v7010_v56 }
  0xd4   :  { %5712 = vmatmul.mubr.f32.vlgmr.msra.gmra.mrb[8].mxu1 %v7014_v63  ;;  %v7199_v63 = vand.u32 4294901760, %v1873_v1 }
  0xd5   :  { %5714 = vmatprep.mubr.f32.mxu1 %v7034_v31 }
  0xd8   :  { %5715 = vmatmul.mubr.f32.gmra.mrb[10].mxu1 %v7038_v51 }
  0xd9   :  { %5717 = vmatprep.mubr.f32.mxu1 %v7071_v26 }
  0xdc   :  { %5718 = vmatmul.mubr.f32.gmra.mrb[12].mxu1 %v7074_v37 }
  0xdd   :  { %5720 = vmatprep.mubr.f32.mxu1 %v7091_v11 }
  0xe0   :  { %5721 = vmatmul.mubr.f32.gmra.mrb[14].mxu1 %v7094_v16 }
  0xe1   :  { %5835 = vmatprep.mubr.f32.mxu1 %v7005_v53 }
 0x143   :  { %v5389_v22 = vpop.f32.mrb[0].mxu0 }
 0x144   :  { %v826_v58 = vpop.f32.mrb[1].mxu0  ;;  %v1657_v7 = vmul.f32 %v5389_v22, %v5389_v22 }
 0x145   :  { %v1656_v25 = vmul.f32 %v826_v58, %v826_v58 }
 0x147   :  { %v5485_v24 = vpop.f32.mrb[0].mxu1  ;;  %v5392_v28 = vpop.f32.mrb[2].mxu0 }
 0x148   :  { %v1665_v38 = vmul.f32 %v5485_v24, %v5485_v24  ;;  %v1610_v39 = vpop.f32.mrb[1].mxu1  ;;  %v838_v41 = vpop.f32.mrb[3].mxu0  ;;  %v1659_v48 = vmul.f32 %v5392_v28, %v5392_v28  ;;  %v1883_v24 = vsub.f32 %v7166_v13, %v7180_v20 }
 0x149   :  { %v1664_v59 = vmul.f32 %v1610_v39, %v1610_v39  ;;  %v1658_v49 = vmul.f32 %v838_v41, %v838_v41 }
 0x14a   :  { %v7151_v18 = vadd.f32 %v1665_v38, %v1657_v7 }
 0x14b   :  { %v7156_v33 = vadd.f32 %v1664_v59, %v1656_v25  ;;  %v5488_v43 = vpop.f32.mrb[2].mxu1  ;;  %v5395_v42 = vpop.f32.mrb[4].mxu0 }
 0x14c   :  { %6451 = vrsqrt.f32 %v7151_v18  ;;  %v1622_v60 = vpop.f32.mrb[3].mxu1  ;;  %v850_v4 = vpop.f32.mrb[5].mxu0  ;;  %v1667_v29 = vmul.f32 %v5488_v43, %v5488_v43  ;;  %v1661_v34 = vmul.f32 %v5395_v42, %v5395_v42  ;;  %vm1689_vm4 = vcmp.eq.f32.partialorder %v7151_v18, inf }
 0x14d   :  { %6453 = vrsqrt.f32 %v7156_v33  ;;  %v1666_v12 = vmul.f32 %v1622_v60, %v1622_v60  ;;  %v1660_v55 = vmul.f32 %v850_v4, %v850_v4  ;;  %vm1691_vm5 = vcmp.eq.f32.partialorder %v7151_v18, 0.0 }
 0x14e   :  { %v7172_v47 = vadd.f32 %v1667_v29, %v1659_v48  ;;  %v1692_v31 = vand.u32 2147483648, %v7151_v18  ;;  %vm1682_vm6 = vcmp.eq.f32.partialorder %v7156_v33, inf  ;;  %vm1684_vm7 = vcmp.eq.f32.partialorder %v7156_v33, 0.0 }
 0x14f   :  { %v5491_v45 = vpop.f32.mrb[4].mxu1  ;;  %v5398_v46 = vpop.f32.mrb[6].mxu0  ;;  %v7174_v52 = vadd.f32 %v1666_v12, %v1658_v49  ;;  %v1685_v42 = vand.u32 2147483648, %v7156_v33 }
 0x150   :  { %v1669_v54 = vmul.f32 %v5491_v45, %v5491_v45  ;;  %v1634_v57 = vpop.f32.mrb[5].mxu1  ;;  %v862_v0 = vpop.f32.mrb[7].mxu0  ;;  %6455 = vrsqrt.f32 %v7172_v47  ;;  %v1663_v19 = vmul.f32 %v5398_v46, %v5398_v46  ;;  %vm1703_vm8 = vcmp.eq.f32.partialorder %v7172_v47, inf }
 0x151   :  { %v1668_v2 = vmul.f32 %v1634_v57, %v1634_v57  ;;  %6457 = vrsqrt.f32 %v7174_v52  ;;  %v1662_v50 = vmul.f32 %v862_v0, %v862_v0  ;;  %vm1705_vm9 = vcmp.eq.f32.partialorder %v7172_v47, 0.0 }
 0x152   :  { %v7187_v22 = vadd.f32 %v1669_v54, %v1661_v34  ;;  %v1706_v48 = vand.u32 2147483648, %v7172_v47  ;;  %vm1696_vm10 = vcmp.eq.f32.partialorder %v7174_v52, inf  ;;  %vm1698_vm11 = vcmp.eq.f32.partialorder %v7174_v52, 0.0 }
 0x153   :  { %v5494_v21 = vpop.f32.mrb[6].mxu1  ;;  %v7189_v56 = vadd.f32 %v1668_v2, %v1660_v55  ;;  %v1699_v26 = vand.u32 2147483648, %v7174_v52 }
 0x154   :  { %v1671_v32 = vmul.f32 %v5494_v21, %v5494_v21  ;;  %v1646_v58 = vpop.f32.mrb[7].mxu1  ;;  %6459 = vrsqrt.f32 %v7187_v22  ;;  %vm1717_vm12 = vcmp.eq.f32.partialorder %v7187_v22, inf  ;;  %vm1719_vm13 = vcmp.eq.f32.partialorder %v7187_v22, 0.0 }
 0x155   :  { %v1670_v7 = vmul.f32 %v1646_v58, %v1646_v58  ;;  %6461 = vrsqrt.f32 %v7189_v56  ;;  %v1720_v60 = vand.u32 2147483648, %v7187_v22  ;;  %vm1710_vm14 = vcmp.eq.f32.partialorder %v7189_v56, inf }
 0x156   :  { %v6452_v25 = vpop.eup %6451  ;;  %v7208_v41 = vadd.f32 %v1671_v32, %v1663_v19  ;;  %vm1712_vm15 = vcmp.eq.f32.partialorder %v7189_v56, 0.0  ;;  %v1713_v54 = vand.u32 2147483648, %v7189_v56 }
 0x157   :  { %v6454_v28 = vpop.eup %6453  ;;  %v1688_v38 = vmul.f32 %v6452_v25, %v7151_v18  ;;  %v7210_v59 = vadd.f32 %v1670_v7, %v1662_v50 }
 0x158   :  { %v1681_v39 = vmul.f32 %v6454_v28, %v7156_v33  ;;  %6463 = vrsqrt.f32 %v7208_v41  ;;  %vm1731_vm0 = vcmp.eq.f32.partialorder %v7208_v41, inf  ;;  %vm1733_vm3 = vcmp.eq.f32.partialorder %v7208_v41, 0.0 }
 0x159   :  { %v1690_v43 = vsel %vm1689_vm4, %v7151_v18, %v1688_v38  ;;  %6465 = vrsqrt.f32 %v7210_v59  ;;  %v1734_v0 = vand.u32 2147483648, %v7208_v41  ;;  %vm1724_vm4 = vcmp.eq.f32.partialorder %v7210_v59, inf }
 0x15a   :  { %v1683_v51 = vsel %vm1682_vm6, %v7156_v33, %v1681_v39  ;;  %v6456_v49 = vpop.eup %6455  ;;  %v1693_v29 = vsel %vm1691_vm5, %v1692_v31, %v1690_v43  ;;  %vm1726_vm5 = vcmp.eq.f32.partialorder %v7210_v59, 0.0  ;;  %v1727_v53 = vand.u32 2147483648, %v7210_v59 }
 0x15b   :  { %v1686_v4 = vsel %vm1684_vm7, %v1685_v42, %v1683_v51  ;;  %v6458_v12 = vpop.eup %6457  ;;  %v1702_v34 = vmul.f32 %v6456_v49, %v7172_v47  ;;  %v1737_v37 = vmul.f32 0.33333334, %v1693_v29 }
 0x15c   :  { %v1736_v45 = vmul.f32 0.33333334, %v1686_v4  ;;  %v1695_v46 = vmul.f32 %v6458_v12, %v7174_v52 }
 0x15d   :  { %v1704_v18 = vsel %vm1703_vm8, %v7172_v47, %v1702_v34  ;;  %v1781_v33 = vand.u32 4294901760, %v1737_v37 }
 0x15e   :  { %v1778_v11 = vand.u32 4294901760, %v1736_v45  ;;  %v6460_v55 = vpop.eup %6459  ;;  %v1697_v57 = vsel %vm1696_vm10, %v7174_v52, %v1695_v46  ;;  %v1707_v2 = vsel %vm1705_vm9, %v1706_v48, %v1704_v18 }
 0x15f   :  { %v6462_v3 = vpop.eup %6461  ;;  %v1716_v1 = vmul.f32 %v6460_v55, %v7187_v22  ;;  %v1700_v16 = vsel %vm1698_vm11, %v1699_v26, %v1697_v57  ;;  %v1739_v21 = vmul.f32 0.33333334, %v1707_v2  ;;  %v1899_v7 = vsub.f32 %v1737_v37, %v1781_v33 }
 0x160   :  { %v7253_v19 = vpack.c.bf16 %v1781_v33, %v1778_v11  ;;  %v1709_v32 = vmul.f32 %v6462_v3, %v7189_v56  ;;  %v1738_v50 = vmul.f32 0.33333334, %v1700_v16  ;;  %v1892_v58 = vsub.f32 %v1736_v45, %v1778_v11 }
 0x161   :  { %v1718_v47 = vsel %vm1717_vm12, %v7187_v22, %v1716_v1  ;;  %v1787_v25 = vand.u32 4294901760, %v1739_v21  ;;  %v1900_v26 = vand.u32 4294901760, %v1899_v7 }
 0x162   :  { %6000 = vmatprep.subr.bf16.mxu0 %v7253_v19  ;;  %v6464_v28 = vpop.eup %6463  ;;  %v1711_v52 = vsel %vm1710_vm14, %v7189_v56, %v1709_v32  ;;  %v1784_v38 = vand.u32 4294901760, %v1738_v50  ;;  %v1721_v31 = vsel %vm1719_vm13, %v1720_v60, %v1718_v47  ;;  %v1893_v39 = vand.u32 4294901760, %v1892_v58 }
 0x163   :  { %6002 = vmatpush3.bf16.msra.mxu0 %v7253_v19  ;;  %v6466_v43 = vpop.eup %6465  ;;  %v1730_v42 = vmul.f32 %v6464_v28, %v7208_v41  ;;  %v1714_v51 = vsel %vm1712_vm15, %v1713_v54, %v1711_v52  ;;  %v1741_v48 = vmul.f32 0.33333334, %v1721_v31  ;;  %v1901_v34 = vsub.f32 %v1899_v7, %v1900_v26 }
 0x164   :  { %v1723_v49 = vmul.f32 %v6466_v43, %v7210_v59  ;;  %v7274_v4 = vpack.c.bf16 %v1787_v25, %v1784_v38  ;;  %v1740_v29 = vmul.f32 0.33333334, %v1714_v51  ;;  %v1894_v12 = vsub.f32 %v1892_v58, %v1893_v39 }
 0x165   :  { %v1732_v22 = vsel %vm1731_vm0, %v7208_v41, %v1730_v42  ;;  %v1793_v60 = vand.u32 4294901760, %v1741_v48  ;;  %v1906_v45 = vsub.f32 %v1738_v50, %v1784_v38  ;;  %v1902_v33 = vand.u32 4294901760, %v1901_v34 }
 0x166   :  { %v1725_v56 = vsel %vm1724_vm4, %v7210_v59, %v1723_v49  ;;  %6004 = vmatprep.subr.bf16.mxu0 %v7274_v4  ;;  %v1790_v37 = vand.u32 4294901760, %v1740_v29  ;;  %v1735_v46 = vsel %vm1733_vm3, %v1734_v0, %v1732_v22  ;;  %v1895_v54 = vand.u32 4294901760, %v1894_v12 }
 0x167   :  { %6006 = vmatpush3.bf16.msra.mxu0 %v7274_v4  ;;  %v1728_v18 = vsel %vm1726_vm5, %v1727_v53, %v1725_v56  ;;  %v1743_v11 = vmul.f32 0.33333334, %v1735_v46  ;;  %v1907_v55 = vand.u32 4294901760, %v1906_v45  ;;  %v1913_v3 = vsub.f32 %v1739_v21, %v1787_v25 }
 0x168   :  { %v7288_v57 = vpack.c.bf16 %v1793_v60, %v1790_v37  ;;  %v1742_v2 = vmul.f32 0.33333334, %v1728_v18  ;;  %v1920_v1 = vsub.f32 %v1740_v29, %v1790_v37  ;;  %v6015_v32 = vpack.c.bf16 %v1902_v33, %v1895_v54 }
 0x169   :  { %v1799_v16 = vand.u32 4294901760, %v1743_v11  ;;  %v1908_v50 = vsub.f32 %v1906_v45, %v1907_v55  ;;  %v1927_v47 = vsub.f32 %v1741_v48, %v1793_v60  ;;  %v1914_v0 = vand.u32 4294901760, %v1913_v3 }
 0x16a   :  { %6008 = vmatprep.subr.bf16.mxu0 %v7288_v57  ;;  %v1796_v41 = vand.u32 4294901760, %v1742_v2  ;;  %v1921_v28 = vand.u32 4294901760, %v1920_v1  ;;  %v6031_v52 = vpack.c.bf16 %v1899_v7, %v1892_v58  ;;  %v6035_v31 = vpack.c.bf16 %v1913_v3, %v1906_v45 }
 0x16b   :  { %6010 = vmatpush3.bf16.msra.mxu0 %v7288_v57  ;;  %v1909_v59 = vand.u32 4294901760, %v1908_v50  ;;  %v1928_v53 = vand.u32 4294901760, %v1927_v47  ;;  %v1941_v38 = vsub.f32 %v1743_v11, %v1799_v16  ;;  %v1915_v21 = vsub.f32 %v1913_v3, %v1914_v0  ;;  %v43_v3 = vld [vmem:[%s7733_s5 + $0x18] sm:$0xff]  ;;  %v46_v50 = vld [vmem:[%s7734_s6 + $0x10] sm:$0xff] }
 0x16c   :  { %v7292_v43 = vpack.c.bf16 %v1799_v16, %v1796_v41  ;;  %v1922_v25 = vsub.f32 %v1920_v1, %v1921_v28  ;;  %v1934_v42 = vsub.f32 %v1742_v2, %v1796_v41  ;;  %v6039_v48 = vpack.c.bf16 %v1927_v47, %v1920_v1  ;;  %v41_v2 = vld [vmem:[%s7733_s5 + $0x8] sm:$0xff]  ;;  %v44_v16 = vld [vmem:[%s7734_s6] sm:$0xff] }
 0x16d   :  { %v1929_v51 = vsub.f32 %v1927_v47, %v1928_v53  ;;  %v1942_v49 = vand.u32 4294901760, %v1941_v38  ;;  %v7294_v29 = vpack.c.bf16 %v1900_v26, %v1893_v39  ;;  %v1916_v12 = vand.u32 4294901760, %v1915_v21  ;;  %v45_v1 = vld [vmem:[%s7734_s6 + $0x8] sm:$0xff]  ;;  %v4911_v47 = vld [vmem:[%s7729_s1 + $0x40] sm:$0xff] }
 0x16e   :  { %6012 = vmatprep.subr.bf16.mxu0 %v7292_v43  ;;  %v1923_v58 = vand.u32 4294901760, %v1922_v25  ;;  %v1935_v7 = vand.u32 4294901760, %v1934_v42  ;;  %v6043_v22 = vpack.c.bf16 %v1941_v38, %v1934_v42  ;;  %v7298_v45 = vpack.c.bf16 %v1914_v0, %v1907_v55  ;;  %v42_v55 = vld [vmem:[%s7733_s5 + $0x10] sm:$0xff]  ;;  %v48_v41 = vld [vmem:[#allocation2] sm:$0x1] }
 0x16f   :  { %6014 = vmatpush3.bf16.msra.mxu0 %v7292_v43  ;;  %v1930_v60 = vand.u32 4294901760, %v1929_v51  ;;  %v1943_v34 = vsub.f32 %v1941_v38, %v1942_v49  ;;  %v7300_v56 = vpack.c.bf16 %v1928_v53, %v1921_v28  ;;  %v6019_v37 = vpack.c.bf16 %v1916_v12, %v1909_v59  ;;  %1756 = vperm.xlu1 %6450, %v42_v55   ;;  %v4912_v28 = vld [vmem:[%s7729_s1 + $0x48] sm:$0xff]  ;;  %v4915_v25 = vld [vmem:[%s7729_s1 + $0x60] sm:$0xff] }
 0x170   :  { %6016 = vmatprep.subr.bf16.mxu0 %v6015_v32  ;;  %v1936_v46 = vsub.f32 %v1934_v42, %v1935_v7  ;;  %v7302_v54 = vpack.c.bf16 %v1942_v49, %v1935_v7  ;;  %v7308_v11 = vand.u32 4294901760, %v1883_v24  ;;  %v40_v24 = vld [vmem:[%s7733_s5] sm:$0xff]  ;;  %v2521_v0 = vsel %vm62_vm2, %v4911_v47, 0.0 }
 0x171   :  { %v6023_v39 = vpack.c.bf16 %v1930_v60, %v1923_v58  ;;  %v1944_v26 = vand.u32 4294901760, %v1943_v34  ;;  %1746 = vperm.xlu0 %6449, %v40_v24   ;;  %v3314_v59 = vsel %vm87_vm1, %v2521_v0, 0  ;;  %v2522_v53 = vsel %vm62_vm2, %v4912_v28, 0.0  ;;  %v4917_v58 = vld [vmem:[%s7729_s1 + $0x70] sm:$0xff] }
 0x172   :  { %5512 = vmatmul.mubr.f32.vlgmr.msra.gmra.mrb[8].mxu0 %v7192_v14  ;;  %v1937_v18 = vand.u32 4294901760, %v1936_v46  ;;  %v7386_v21 = vand.u32 4294901760, %v3314_v59  ;;  %v3317_v42 = vsel %vm87_vm1, %v2522_v53, 0 }
 0x173   :  { %6018 = vmatpush3.bf16.msra.mxu0 %v6015_v32  ;;  %5514 = vmatprep.mubr.f32.mxu0 %v7199_v63  ;;  %v47_v32 = vld [vmem:[%s7734_s6 + $0x18] sm:$0xff]  ;;  %v7407_v12 = vand.u32 4294901760, %v3317_v42 }
 0x174   :  { %6020 = vmatprep.subr.bf16.mxu0 %v6019_v37  ;;  %v6027_v33 = vpack.c.bf16 %v1944_v26, %v1937_v18  ;;  %1761 = vperm.xlu1 %6450, %v43_v3  }
 0x175   :  { %1751 = vperm.xlu0 %6449, %v41_v2  }
 0x176   :  { %5515 = vmatmul.mubr.f32.gmra.mrb[10].mxu0 %v7308_v11 }
 0x177   :  { %6022 = vmatpush3.bf16.msra.mxu0 %v6019_v37  ;;  %5533 = vmatprep.mubr.f32.mxu0 %v6987_v35  ;;  %v7428_v37 = vsub.f32 %v3317_v42, %v7407_v12 }
 0x178   :  { %6024 = vmatprep.subr.bf16.mxu0 %v6023_v39  ;;  %2454 = vperm.xlu1 %6450, %v45_v1  }
 0x179   :  { %2449 = vperm.xlu0 %6449, %v44_v16  }
 0x17b   :  { %6026 = vmatpush3.bf16.msra.mxu0 %v6023_v39 }
 0x17c   :  { %6028 = vmatprep.subr.bf16.mxu0 %v6027_v33  ;;  %2464 = vperm.xlu1 %6450, %v47_v32  }
 0x17d   :  { %2459 = vperm.xlu0 %6449, %v46_v50  }
 0x17f   :  { %6030 = vmatpush3.bf16.msra.mxu0 %v6027_v33 }
 0x180   :  { %6032 = vmatprep.subr.bf16.mxu0 %v6031_v52 }
 0x181   :  { %2487 = vperm.xlu0 %6449, %v48_v41  }
 0x182   :  { %5534 = vmatmul.mubr.f32.vlgmr.msra.gmra.mrb[8].mxu0 %v7139_v5 }
 0x183   :  { %6034 = vmatpush3.bf16.msra.mxu0 %v6031_v52  ;;  %5536 = vmatprep.mubr.f32.mxu0 %v7141_v10  ;;  %v4913_v52 = vld [vmem:[%s7729_s1 + $0x50] sm:$0xff] }
 0x184   :  { %6036 = vmatprep.subr.bf16.mxu0 %v6035_v31  ;;  %v2523_v38 = vsel %vm62_vm2, %v4913_v52, 0.0 }
 0x185   :  { %v3320_v51 = vsel %vm87_vm1, %v2523_v38, 0 }
 0x186   :  { %5537 = vmatmul.mubr.f32.gmra.mrb[10].mxu0 %v7149_v62  ;;  %v7414_v7 = vand.u32 4294901760, %v3320_v51 }
 0x187   :  { %6038 = vmatpush3.bf16.msra.mxu0 %v6035_v31  ;;  %5555 = vmatprep.mubr.f32.mxu0 %v6990_v36  ;;  %v4914_v31 = vld [vmem:[%s7729_s1 + $0x58] sm:$0xff] }
 0x188   :  { %6040 = vmatprep.subr.bf16.mxu0 %v6039_v48  ;;  %v2524_v49 = vsel %vm62_vm2, %v4914_v31, 0.0 }
 0x18b   :  { %6042 = vmatpush3.bf16.msra.mxu0 %v6039_v48  ;;  %v2525_v48 = vsel %vm62_vm2, %v4915_v25, 0.0 }
 0x18c   :  { %6044 = vmatprep.subr.bf16.mxu0 %v6043_v22  ;;  %v3326_v60 = vsel %vm87_vm1, %v2525_v48, 0 }
 0x18d   :  { %v7436_v39 = vand.u32 4294901760, %v3326_v60 }
 0x18f   :  { %6046 = vmatpush3.bf16.msra.mxu0 %v6043_v22  ;;  %v3323_v22 = vsel %vm87_vm1, %v2524_v49, 0  ;;  %v7455_v1 = vsub.f32 %v3326_v60, %v7436_v39 }
 0x190   :  { %6048 = vmatprep.subr.bf16.mxu0 %v7253_v19  ;;  %v7430_v46 = vand.u32 4294901760, %v3323_v22 }
 0x191   :  { %v3446_v28 = vand.u32 4294901760, %v7455_v1 }
 0x192   :  { %5556 = vmatmul.mubr.f32.vlgmr.msra.gmra.mrb[8].mxu0 %v7147_v61  ;;  %v7448_v55 = vsub.f32 %v3323_v22, %v7430_v46 }
 0x193   :  { %6050 = vmatpush3.bf16.msra.mxu0 %v7253_v19  ;;  %5558 = vmatprep.mubr.f32.mxu0 %v7154_v27  ;;  %v3447_v42 = vsub.f32 %v7455_v1, %v3446_v28 }
 0x194   :  { %6052 = vmatprep.subr.bf16.mxu0 %v7274_v4  ;;  %v3436_v50 = vand.u32 4294901760, %v7448_v55 }
 0x196   :  { %5559 = vmatmul.mubr.f32.gmra.mrb[10].mxu0 %v7166_v13  ;;  %v3437_v53 = vsub.f32 %v7448_v55, %v3436_v50 }
 0x197   :  { %6054 = vmatpush3.bf16.msra.mxu0 %v7274_v4  ;;  %5577 = vmatprep.mubr.f32.mxu0 %v6993_v44 }
 0x198   :  { %6056 = vmatprep.subr.bf16.mxu0 %v7288_v57  ;;  %v3438_v49 = vand.u32 4294901760, %v3437_v53 }
 0x19b   :  { %6058 = vmatpush3.bf16.msra.mxu0 %v7288_v57 }
 0x19c   :  { %6060 = vmatprep.subr.bf16.mxu0 %v7292_v43 }
 0x19f   :  { %6062 = vmatpush3.bf16.msra.mxu0 %v7292_v43 }
 0x1a0   :  { %6064 = vmatprep.subr.bf16.mxu0 %v7294_v29 }
 0x1a2   :  { %5578 = vmatmul.mubr.f32.vlgmr.msra.gmra.mrb[8].mxu0 %v7163_v6 }
 0x1a3   :  { %6066 = vmatpush3.bf16.msra.mxu0 %v7294_v29  ;;  %5580 = vmatprep.mubr.f32.mxu0 %v7169_v15  ;;  %v4916_v29 = vld [vmem:[%s7729_s1 + $0x68] sm:$0xff] }
 0x1a4   :  { %6068 = vmatprep.subr.bf16.mxu0 %v7298_v45  ;;  %v2526_v34 = vsel %vm62_vm2, %v4916_v29, 0.0 }
 0x1a5   :  { %v3329_v26 = vsel %vm87_vm1, %v2526_v34, 0 }
 0x1a6   :  { %5581 = vmatmul.mubr.f32.gmra.mrb[10].mxu0 %v7180_v20  ;;  %v7450_v2 = vand.u32 4294901760, %v3329_v26 }
 0x1a7   :  { %6070 = vmatpush3.bf16.msra.mxu0 %v7298_v45  ;;  %5599 = vmatprep.mubr.f32.mxu0 %v6987_v35  ;;  %v2527_v45 = vsel %vm62_vm2, %v4917_v58, 0.0  ;;  %v3448_v58 = vand.u32 4294901760, %v3447_v42 }
 0x1a8   :  { %6072 = vmatprep.subr.bf16.mxu0 %v7300_v56  ;;  %v3332_v18 = vsel %vm87_vm1, %v2527_v45, 0 }
 0x1a9   :  { %v7457_v17 = vand.u32 4294901760, %v3332_v18 }
 0x1ab   :  { %6074 = vmatpush3.bf16.msra.mxu0 %v7300_v56  ;;  %v3465_v52 = vsub.f32 %v3332_v18, %v7457_v17 }
 0x1ac   :  { %6076 = vmatprep.subr.bf16.mxu0 %v7302_v54 }
 0x1af   :  { %6078 = vmatpush3.bf16.msra.mxu0 %v7302_v54  ;;  %v7434_v54 = vsub.f32 %v3320_v51, %v7414_v7  ;;  %v3466_v51 = vand.u32 4294901760, %v3465_v52 }
 0x1b0   :  { %6080 = vmatprep.subr.bf16.mxu0 %v7253_v19 }
 0x1b1   :  { %v3426_v3 = vand.u32 4294901760, %v7434_v54  ;;  %v3467_v22 = vsub.f32 %v3465_v52, %v3466_v51 }
 0x1b2   :  { %5600 = vmatmul.mubr.f32.vlgmr.msra.gmra.mrb[8].mxu0 %v7139_v5 }
 0x1b3   :  { %6082 = vmatpush3.bf16.msra.mxu0 %v7253_v19  ;;  %5602 = vmatprep.mubr.f32.mxu0 %v7141_v10  ;;  %v7405_v19 = vsub.f32 %v3314_v59, %v7386_v21  ;;  %v3427_v0 = vsub.f32 %v7434_v54, %v3426_v3  ;;  %v3468_v45 = vand.u32 4294901760, %v3467_v22 }
 0x1b4   :  { %6084 = vmatprep.subr.bf16.mxu0 %v7274_v4 }
 0x1b5   :  { %v3406_v56 = vand.u32 4294901760, %v7405_v19  ;;  %v3428_v25 = vand.u32 4294901760, %v3427_v0 }
 0x1b6   :  { %5603 = vmatmul.mubr.f32.gmra.mrb[10].mxu0 %v7149_v62 }
 0x1b7   :  { %6086 = vmatpush3.bf16.msra.mxu0 %v7274_v4  ;;  %5621 = vmatprep.mubr.f32.mxu0 %v6987_v35  ;;  %v4918_v4 = vld [vmem:[%s7729_s1 + $0x78] sm:$0xff]  ;;  %v3407_v24 = vsub.f32 %v7405_v19, %v3406_v56  ;;  %s6528_s1 = smov [#allocation3]  }
 0x1b8   :  { %6088 = vmatprep.subr.bf16.mxu0 %v7288_v57  ;;  %v2528_v33 = vsel %vm62_vm2, %v4918_v4, 0.0  ;;  %s4895_s17 = sshll.u32 %s6528_s1, 4  ;;  %s4896_s17 = int_to_ptr.vmem [resolvable:$true] %s4895_s17 }
 0x1b9   :  { %v3335_v16 = vsel %vm87_vm1, %v2528_v33, 0  ;;  %v3408_v41 = vand.u32 4294901760, %v3407_v24  ;;  %vm2471_vm1 = vcmask 31744   ;;  %s6503_s18 = scalar_lea.vmem %s4896_s17, 32  ;;  %p6508_p1 = scmp.lt.s32.totalorder %s4896_s17, %s4896_s17 }
 0x1ba   :  { %v7469_v47 = vand.u32 4294901760, %v3335_v16  ;;  %p6504_p0 = scmp.ne.s32.totalorder %s4896_s17, %s6503_s18  ;;  %p6509_p2 = scmp.lt.s32.totalorder %s6503_s18, %s6503_s18 }
 0x1bb   :  { %6090 = vmatpush3.bf16.msra.mxu0 %v7288_v57  ;;  %v3416_v57 = vand.u32 4294901760, %v7428_v37 }
 0x1bc   :  { %6092 = vmatprep.subr.bf16.mxu0 %v7292_v43  ;;  %v3475_v31 = vsub.f32 %v3335_v16, %v7469_v47  ;;  %p6510_p3 = por %p6509_p2, %p6508_p1 }
 0x1bd   :  { %v3417_v32 = vsub.f32 %v7428_v37, %v3416_v57 }
 0x1be   :  { %v3476_v29 = vand.u32 4294901760, %v3475_v31  ;;  %p6511_p4 = pnand %p6510_p3, %p6504_p0 }
 0x1bf   :  { %6094 = vmatpush3.bf16.msra.mxu0 %v7292_v43  ;;  %v7467_v43 = vsub.f32 %v3329_v26, %v7450_v2  ;;  %v3418_v59 = vand.u32 4294901760, %v3417_v32 }
 0x1c0   :  { %6120 = vmatprep.subr.bf16.mxu0 %v6588_v9  ;;  %v3477_v34 = vsub.f32 %v3475_v31, %v3476_v29 }
 0x1c1   :  { %v3456_v38 = vand.u32 4294901760, %v7467_v43 }
 0x1c2   :  { %5622 = vmatmul.mubr.f32.vlgmr.msra.gmra.mrb[8].mxu0 %v7139_v5  ;;  %v3478_v4 = vand.u32 4294901760, %v3477_v34 }
 0x1c3   :  { %6122 = vmatpush3.bf16.msra.mxu0 %v6588_v9  ;;  %5624 = vmatprep.mubr.f32.mxu0 %v7141_v10  ;;  %v3457_v48 = vsub.f32 %v7467_v43, %v3456_v38 }
 0x1c4   :  { %6124 = vmatprep.subr.bf16.mxu0 %v6657_v40 }
 0x1c5   :  { %v3458_v60 = vand.u32 4294901760, %v3457_v48 }
 0x1c6   :  { %5625 = vmatmul.mubr.f32.gmra.mrb[10].mxu0 %v7149_v62 }
 0x1c7   :  { %5727 = vmatprep.mubr.f32.mxu0 %v3408_v41 }
 0x1ca   :  { %5728 = vmatmul.mubr.f32.vlgmr.msra.gmra.mrb[12].mxu0 %v3418_v59 }
 0x1cb   :  { %6126 = vmatpush3.bf16.msra.mxu0 %v6657_v40  ;;  %5730 = vmatprep.mubr.f32.mxu0 %v3428_v25 }
 0x1cc   :  { %6128 = vmatprep.subr.bf16.mxu0 %v6626_v23 }
 0x1ce   :  { %5731 = vmatmul.mubr.f32.gmra.mrb[14].mxu0 %v3438_v49 }
 0x1cf   :  { %5733 = vmatprep.mubr.f32.mxu0 %v3448_v58 }
 0x1d2   :  { %5734 = vmatmul.mubr.f32.gmra.mrb[16].mxu0 %v3458_v60 }
 0x1d3   :  { %5736 = vmatprep.mubr.f32.mxu0 %v3468_v45 }
 0x1d6   :  { %5737 = vmatmul.mubr.f32.gmra.mrb[18].mxu0 %v3478_v4 }
 0x1d7   :  { %5743 = vmatprep.mubr.f32.mxu0 %v7386_v21 }
 0x1da   :  { %5744 = vmatmul.mubr.f32.vlgmr.msra.gmra.mrb[12].mxu0 %v7407_v12 }
 0x1db   :  { %6130 = vmatpush3.bf16.msra.mxu0 %v6626_v23  ;;  %5746 = vmatprep.mubr.f32.mxu0 %v7414_v7 }
 0x1dc   :  { %6132 = vmatprep.subr.bf16.mxu0 %v6588_v9 }
 0x1de   :  { %5747 = vmatmul.mubr.f32.gmra.mrb[14].mxu0 %v7430_v46 }
 0x1df   :  { %5749 = vmatprep.mubr.f32.mxu0 %v7436_v39 }
 0x1e2   :  { %5750 = vmatmul.mubr.f32.gmra.mrb[16].mxu0 %v7450_v2 }
 0x1e3   :  { %5752 = vmatprep.mubr.f32.mxu0 %v7457_v17 }
 0x1e6   :  { %5753 = vmatmul.mubr.f32.gmra.mrb[18].mxu0 %v7469_v47 }
 0x1e7   :  { %5759 = vmatprep.mubr.f32.mxu0 %v7405_v19 }
 0x1ea   :  { %5760 = vmatmul.mubr.f32.vlgmr.msra.gmra.mrb[12].mxu0 %v7428_v37 }
 0x1eb   :  { %6134 = vmatpush3.bf16.msra.mxu0 %v6588_v9  ;;  %5762 = vmatprep.mubr.f32.mxu0 %v7434_v54 }
 0x1ec   :  { %6136 = vmatprep.subr.bf16.mxu0 %v6888_v30 }
 0x1ee   :  { %5763 = vmatmul.mubr.f32.gmra.mrb[14].mxu0 %v7448_v55  ;;  %v7536_v37 = vpop.permute.xlu1 %1756 }
 0x1ef   :  { %5765 = vmatprep.mubr.f32.mxu0 %v7455_v1 }
 0x1f2   :  { %5766 = vmatmul.mubr.f32.gmra.mrb[16].mxu0 %v7467_v43 }
 0x1f3   :  { %5768 = vmatprep.mubr.f32.mxu0 %v3465_v52  ;;  %v7542_v33 = vpop.permute.xlu1 %1761 }
 0x1f6   :  { %5769 = vmatmul.mubr.f32.gmra.mrb[18].mxu0 %v3475_v31 }
 0x1f7   :  { %5775 = vmatprep.mubr.f32.mxu0 %v3406_v56 }
 0x1fa   :  { %5776 = vmatmul.mubr.f32.vlgmr.msra.gmra.mrb[12].mxu0 %v3416_v57 }
 0x1fb   :  { %6138 = vmatpush3.bf16.msra.mxu0 %v6888_v30  ;;  %5778 = vmatprep.mubr.f32.mxu0 %v3426_v3  ;;  %v7546_v3 = vpop.permute.xlu1 %2454 }
 0x1fc   :  { %6140 = vmatprep.subr.bf16.mxu0 %v6588_v9 }
 0x1fe   :  { %5779 = vmatmul.mubr.f32.gmra.mrb[14].mxu0 %v3436_v50 }
 0x1ff   :  { %5781 = vmatprep.mubr.f32.mxu0 %v3446_v28 }
 0x202   :  { %5782 = vmatmul.mubr.f32.gmra.mrb[16].mxu0 %v3456_v38 }
 0x203   :  { %5784 = vmatprep.mubr.f32.mxu0 %v3466_v51 }
 0x206   :  { %5785 = vmatmul.mubr.f32.gmra.mrb[18].mxu0 %v3476_v29 }
 0x207   :  { %5791 = vmatprep.mubr.f32.mxu0 %v7386_v21 }
 0x20a   :  { %5792 = vmatmul.mubr.f32.vlgmr.msra.gmra.mrb[12].mxu0 %v7407_v12 }
 0x20b   :  { %6142 = vmatpush3.bf16.msra.mxu0 %v6588_v9  ;;  %5794 = vmatprep.mubr.f32.mxu0 %v7414_v7  ;;  %v5713_v9 = vpop.f32.mrb[8].mxu1 }
 0x20c   :  { %v3267_v23 = vpop.f32.mrb[9].mxu1  ;;  %v4098_v48 = vmul.f32 %v5713_v9, %v5713_v9 }
 0x20d   :  { %v5716_v40 = vpop.f32.mrb[10].mxu1  ;;  %v4097_v22 = vmul.f32 %v3267_v23, %v3267_v23 }
 0x20e   :  { %5795 = vmatmul.mubr.f32.gmra.mrb[14].mxu0 %v7430_v46  ;;  %v3279_v30 = vpop.f32.mrb[11].mxu1 }
 0x20f   :  { %5797 = vmatprep.mubr.f32.mxu0 %v7436_v39  ;;  %v5719_v19 = vpop.f32.mrb[12].mxu1 }
 0x210   :  { %v4102_v23 = vmul.f32 %v5719_v19, %v5719_v19 }
 0x212   :  { %5798 = vmatmul.mubr.f32.gmra.mrb[16].mxu0 %v7450_v2 }
 0x213   :  { %5800 = vmatprep.mubr.f32.mxu0 %v7457_v17 }
 0x216   :  { %5801 = vmatmul.mubr.f32.gmra.mrb[18].mxu0 %v7469_v47 }
 0x217   :  { %5807 = vmatprep.mubr.f32.mxu0 %v7386_v21  ;;  %v3291_v21 = vpop.f32.mrb[13].mxu1 }
 0x218   :  { %v7530_v56 = vpop.f32.mrb[14].mxu1 }
 0x21a   :  { %5808 = vmatmul.mubr.f32.vlgmr.msra.gmra.mrb[12].mxu0 %v7407_v12  ;;  %v7532_v12 = vpop.f32.mrb[15].mxu1 }
 0x21b   :  { %5810 = vmatprep.mubr.f32.mxu0 %v7414_v7  ;;  %v7534_v7 = vpop.permute.xlu0 %1746  ;;  %v4103_v19 = vmul.f32 %v7532_v12, %v7532_v12 }
 0x21e   :  { %5811 = vmatmul.mubr.f32.gmra.mrb[14].mxu0 %v7430_v46 }
 0x21f   :  { %5813 = vmatprep.mubr.f32.mxu0 %v7436_v39  ;;  %v7538_v46 = vpop.permute.xlu0 %1751 }
 0x222   :  { %5814 = vmatmul.mubr.f32.gmra.mrb[16].mxu0 %v7450_v2 }
 0x223   :  { %5816 = vmatprep.mubr.f32.mxu0 %v7457_v17  ;;  %v7548_v1 = vpop.permute.xlu0 %2449 }
 0x226   :  { %5817 = vmatmul.mubr.f32.gmra.mrb[18].mxu0 %v7469_v47  ;;  %v7553_v47 = vpop.permute.xlu1 %2464 }
 0x227   :  { %v7555_v41 = vpop.permute.xlu0 %2459 }
 0x295   :  { %v5623_v54 = vpop.f32.mrb[8].mxu0 }
 0x296   :  { %v6239_v39 = vadd.f32 %v5623_v54, %v7538_v46  ;;  %v2421_v26 = vpop.f32.mrb[9].mxu0 }
 0x297   :  { %v6240_v18 = vadd.f32 %v2421_v26, %v7534_v7  ;;  %v4099_v26 = vmul.f32 %v3279_v30, %v3279_v30 }
 0x298   :  { %6467 = vtanh.f32 %v6239_v39  ;;  %v4100_v39 = vmul.f32 %v5716_v40, %v5716_v40 }
 0x299   :  { %6469 = vtanh.f32 %v6240_v18  ;;  %v5626_v24 = vpop.f32.mrb[10].mxu0 }
 0x29a   :  { %v6241_v57 = vadd.f32 %v5626_v24, %v7542_v33  ;;  %v2433_v55 = vpop.f32.mrb[11].mxu0 }
 0x29b   :  { %v6242_v2 = vadd.f32 %v2433_v55, %v7536_v37 }
 0x29c   :  { %6471 = vtanh.f32 %v6241_v57 }
 0x29d   :  { %6473 = vtanh.f32 %v6242_v2 }
 0x2a2   :  { %v6468_v17 = vpop.eup %6467 }
 0x2a3   :  { %v6470_v16 = vpop.eup %6469  ;;  %v2468_v32 = vmul.f32 %v6468_v17, %v7546_v3 }
 0x2a4   :  { %v2467_v50 = vmul.f32 %v6470_v16, %v7548_v1 }
 0x2a5   :  { %v2473_v43 = vsel %vm2471_vm1, %v2468_v32, 0.0  ;;  %v4101_v32 = vmul.f32 %v3291_v21, %v3291_v21 }
 0x2a6   :  { %v6472_v0 = vpop.eup %6471  ;;  %v2472_v28 = vsel %vm2471_vm1, %v2467_v50, 0.0 }
 0x2a7   :  { %v6474_v52 = vpop.eup %6473  ;;  %v2474_v59 = vadd.f32 %v2473_v43, %v2472_v28  ;;  %v2470_v53 = vmul.f32 %v6472_v0, %v7553_v47  ;;  %v4104_v28 = vmul.f32 %v7530_v56, %v7530_v56 }
 0x2a8   :  { %v2469_v38 = vmul.f32 %v6474_v52, %v7555_v41 }
 0x2a9   :  { %v2477_v42 = vsel %vm2471_vm1, %v2470_v53, 0.0 }
 0x2aa   :  { %v2475_v31 = vsel %vm2471_vm1, %v2469_v38, 0.0 }
 0x2ab   :  { %v2476_v25 = vadd.f32 %v2475_v31, %v2474_v59 }
 0x2ad   :  { %v7562_v51 = vadd.f32 %v2477_v42, %v2476_v25 }
 0x2ed   :  { %v5809_v49 = vpop.f32.mrb[12].mxu0 }
 0x2ee   :  { %v4106_v29 = vmul.f32 %v5809_v49, %v5809_v49  ;;  %v4051_v58 = vpop.f32.mrb[13].mxu0 }
 0x2ef   :  { %v4105_v60 = vmul.f32 %v4051_v58, %v4051_v58 }
 0x2f0   :  { %v4114_v34 = vadd.f32 %v4106_v29, %v4098_v48 }
 0x2f1   :  { %v4113_v45 = vadd.f32 %v4105_v60, %v4097_v22  ;;  %v5812_v4 = vpop.f32.mrb[14].mxu0 }
 0x2f2   :  { %6475 = vrsqrt.f32 %v4114_v34  ;;  %v4063_v54 = vpop.f32.mrb[15].mxu0  ;;  %v4108_v18 = vmul.f32 %v5812_v4, %v5812_v4  ;;  %vm4130_vm2 = vcmp.eq.f32.partialorder %v4114_v34, inf  ;;  %vm4132_vm6 = vcmp.eq.f32.partialorder %v4114_v34, 0.0 }
 0x2f3   :  { %6477 = vrsqrt.f32 %v4113_v45  ;;  %v4107_v24 = vmul.f32 %v4063_v54, %v4063_v54  ;;  %v4133_v38 = vand.u32 2147483648, %v4114_v34  ;;  %vm4123_vm7 = vcmp.eq.f32.partialorder %v4113_v45, inf }
 0x2f4   :  { %v7564_v55 = vadd.f32 %v4108_v18, %v4100_v39  ;;  %vm4125_vm8 = vcmp.eq.f32.partialorder %v4113_v45, 0.0  ;;  %v4126_v49 = vand.u32 2147483648, %v4113_v45 }
 0x2f5   :  { %v5815_v57 = vpop.f32.mrb[16].mxu0  ;;  %v7566_v2 = vadd.f32 %v4107_v24, %v4099_v26 }
 0x2f6   :  { %v4110_v9 = vmul.f32 %v5815_v57, %v5815_v57  ;;  %v4075_v17 = vpop.f32.mrb[17].mxu0  ;;  %6479 = vrsqrt.f32 %v7564_v55  ;;  %vm4144_vm9 = vcmp.eq.f32.partialorder %v7564_v55, inf  ;;  %vm4146_vm10 = vcmp.eq.f32.partialorder %v7564_v55, 0.0 }
 0x2f7   :  { %v4109_v16 = vmul.f32 %v4075_v17, %v4075_v17  ;;  %6481 = vrsqrt.f32 %v7566_v2  ;;  %v4147_v48 = vand.u32 2147483648, %v7564_v55  ;;  %vm4137_vm11 = vcmp.eq.f32.partialorder %v7566_v2, inf }
 0x2f8   :  { %v7570_v43 = vadd.f32 %v4110_v9, %v4102_v23  ;;  %vm4139_vm12 = vcmp.eq.f32.partialorder %v7566_v2, 0.0  ;;  %v4140_v29 = vand.u32 2147483648, %v7566_v2 }
 0x2f9   :  { %v5818_v50 = vpop.f32.mrb[18].mxu0  ;;  %v7572_v40 = vadd.f32 %v4109_v16, %v4101_v32 }
 0x2fa   :  { %v4112_v30 = vmul.f32 %v5818_v50, %v5818_v50  ;;  %v4087_v0 = vpop.f32.mrb[19].mxu0  ;;  %6483 = vrsqrt.f32 %v7570_v43  ;;  %vm4158_vm13 = vcmp.eq.f32.partialorder %v7570_v43, inf  ;;  %vm4160_vm14 = vcmp.eq.f32.partialorder %v7570_v43, 0.0 }
 0x2fb   :  { %v4111_v52 = vmul.f32 %v4087_v0, %v4087_v0  ;;  %6485 = vrsqrt.f32 %v7572_v40  ;;  %v4161_v22 = vand.u32 2147483648, %v7570_v43  ;;  %vm4151_vm15 = vcmp.eq.f32.partialorder %v7572_v40, inf }
 0x2fc   :  { %v6476_v59 = vpop.eup %6475  ;;  %v7580_v25 = vadd.f32 %v4112_v30, %v4104_v28  ;;  %vm4153_vm0 = vcmp.eq.f32.partialorder %v7572_v40, 0.0  ;;  %v4154_v57 = vand.u32 2147483648, %v7572_v40 }
 0x2fd   :  { %v6478_v21 = vpop.eup %6477  ;;  %v4129_v53 = vmul.f32 %v6476_v59, %v4114_v34  ;;  %v7582_v56 = vadd.f32 %v4111_v52, %v4103_v19 }
 0x2fe   :  { %v4122_v31 = vmul.f32 %v6478_v21, %v4113_v45  ;;  %6487 = vrsqrt.f32 %v7580_v25  ;;  %vm4172_vm3 = vcmp.eq.f32.partialorder %v7580_v25, inf  ;;  %vm4174_vm4 = vcmp.eq.f32.partialorder %v7580_v25, 0.0 }
 0x2ff   :  { %v4131_v42 = vsel %vm4130_vm2, %v4114_v34, %v4129_v53  ;;  %6489 = vrsqrt.f32 %v7582_v56  ;;  %v4175_v23 = vand.u32 2147483648, %v7580_v25  ;;  %vm4165_vm5 = vcmp.eq.f32.partialorder %v7582_v56, inf }
 0x300   :  { %v4124_v12 = vsel %vm4123_vm7, %v4113_v45, %v4122_v31  ;;  %v6480_v58 = vpop.eup %6479  ;;  %v4134_v4 = vsel %vm4132_vm6, %v4133_v38, %v4131_v42  ;;  %vm4167_vm2 = vcmp.eq.f32.partialorder %v7582_v56, 0.0  ;;  %vm4873_vm6 = vcmask 1040384  }
 0x301   :  { %v4127_v60 = vsel %vm4125_vm8, %v4126_v49, %v4124_v12  ;;  %v6482_v54 = vpop.eup %6481  ;;  %v4143_v39 = vmul.f32 %v6480_v58, %v7564_v55  ;;  %v4178_v18 = vmul.f32 0.33333334, %v4134_v4  ;;  %vm4876_vm7 = vcmask 25600  }
 0x302   :  { %v4177_v26 = vmul.f32 0.33333334, %v4127_v60  ;;  %v4136_v24 = vmul.f32 %v6482_v54, %v7566_v2 }
 0x303   :  { %v4145_v34 = vsel %vm4144_vm9, %v7564_v55, %v4143_v39  ;;  %v4189_v9 = vand.u32 4294901760, %v4178_v18  ;;  %v4168_v55 = vand.u32 2147483648, %v7582_v56 }
 0x304   :  { %v4186_v45 = vand.u32 4294901760, %v4177_v26  ;;  %v6484_v17 = vpop.eup %6483  ;;  %v4138_v16 = vsel %vm4137_vm11, %v7566_v2, %v4136_v24  ;;  %v4148_v32 = vsel %vm4146_vm10, %v4147_v48, %v4145_v34 }
 0x305   :  { %v6486_v50 = vpop.eup %6485  ;;  %v4157_v30 = vmul.f32 %v6484_v17, %v7570_v43  ;;  %v4141_v28 = vsel %vm4139_vm12, %v4140_v29, %v4138_v16  ;;  %v4180_v52 = vmul.f32 0.33333334, %v4148_v32  ;;  %v4307_v53 = vsub.f32 %v4178_v18, %v4189_v9 }
 0x306   :  { %v7615_v0 = vpack.c.bf16 %v4189_v9, %v4186_v45  ;;  %v4150_v59 = vmul.f32 %v6486_v50, %v7572_v40  ;;  %v4179_v19 = vmul.f32 0.33333334, %v4141_v28  ;;  %v4300_v21 = vsub.f32 %v4177_v26, %v4186_v45 }
 0x307   :  { %v4159_v38 = vsel %vm4158_vm13, %v7570_v43, %v4157_v30  ;;  %v4195_v31 = vand.u32 4294901760, %v4180_v52  ;;  %v4308_v54 = vand.u32 4294901760, %v4307_v53 }
 0x308   :  { %6144 = vmatprep.subr.bf16.mxu1 %v7615_v0  ;;  %v6488_v42 = vpop.eup %6487  ;;  %v4152_v2 = vsel %vm4151_vm15, %v7572_v40, %v4150_v59  ;;  %v4192_v49 = vand.u32 4294901760, %v4179_v19  ;;  %v4162_v12 = vsel %vm4160_vm14, %v4161_v22, %v4159_v38  ;;  %v4301_v48 = vand.u32 4294901760, %v4300_v21 }
 0x309   :  { %6146 = vmatpush3.bf16.msra.mxu1 %v7615_v0  ;;  %v6490_v29 = vpop.eup %6489  ;;  %v4171_v58 = vmul.f32 %v6488_v42, %v7580_v25  ;;  %v4155_v60 = vsel %vm4153_vm0, %v4154_v57, %v4152_v2  ;;  %v4182_v4 = vmul.f32 0.33333334, %v4162_v12  ;;  %v4309_v34 = vsub.f32 %v4307_v53, %v4308_v54 }
 0x30a   :  { %v4164_v39 = vmul.f32 %v6490_v29, %v7582_v56  ;;  %v7636_v26 = vpack.c.bf16 %v4195_v31, %v4192_v49  ;;  %v4181_v18 = vmul.f32 0.33333334, %v4155_v60  ;;  %v4302_v24 = vsub.f32 %v4300_v21, %v4301_v48 }
 0x30b   :  { %v4173_v43 = vsel %vm4172_vm3, %v7580_v25, %v4171_v58  ;;  %v4201_v22 = vand.u32 4294901760, %v4182_v4  ;;  %v4314_v45 = vsub.f32 %v4179_v19, %v4192_v49  ;;  %v4310_v50 = vand.u32 4294901760, %v4309_v34 }
 0x30c   :  { %v4166_v40 = vsel %vm4165_vm5, %v7582_v56, %v4164_v39  ;;  %6148 = vmatprep.subr.bf16.mxu1 %v7636_v26  ;;  %v4198_v57 = vand.u32 4294901760, %v4181_v18  ;;  %v4176_v9 = vsel %vm4174_vm4, %v4175_v23, %v4173_v43  ;;  %v4303_v17 = vand.u32 4294901760, %v4302_v24 }
 0x30d   :  { %6150 = vmatpush3.bf16.msra.mxu1 %v7636_v26  ;;  %v4169_v16 = vsel %vm4167_vm2, %v4168_v55, %v4166_v40  ;;  %v4184_v32 = vmul.f32 0.33333334, %v4176_v9  ;;  %v4315_v30 = vand.u32 4294901760, %v4314_v45  ;;  %v4321_v19 = vsub.f32 %v4180_v52, %v4195_v31 }
 0x30e   :  { %v7650_v28 = vpack.c.bf16 %v4201_v22, %v4198_v57  ;;  %v4183_v59 = vmul.f32 0.33333334, %v4169_v16  ;;  %v4328_v38 = vsub.f32 %v4181_v18, %v4198_v57  ;;  %v6159_v2 = vpack.c.bf16 %v4310_v50, %v4303_v17 }
 0x30f   :  { %v4207_v42 = vand.u32 4294901760, %v4184_v32  ;;  %v4316_v49 = vsub.f32 %v4314_v45, %v4315_v30  ;;  %v4335_v12 = vsub.f32 %v4182_v4, %v4201_v22  ;;  %v4322_v23 = vand.u32 4294901760, %v4321_v19 }
 0x310   :  { %6152 = vmatprep.subr.bf16.mxu1 %v7650_v28  ;;  %v4204_v25 = vand.u32 4294901760, %v4183_v59  ;;  %v4329_v29 = vand.u32 4294901760, %v4328_v38  ;;  %v6175_v58 = vpack.c.bf16 %v4307_v53, %v4300_v21  ;;  %v6179_v39 = vpack.c.bf16 %v4321_v19, %v4314_v45 }
 0x311   :  { %6154 = vmatpush3.bf16.msra.mxu1 %v7650_v28  ;;  %v4317_v56 = vand.u32 4294901760, %v4316_v49  ;;  %v4336_v55 = vand.u32 4294901760, %v4335_v12  ;;  %v4349_v60 = vsub.f32 %v4184_v32, %v4207_v42  ;;  %v4323_v52 = vsub.f32 %v4321_v19, %v4322_v23 }
 0x312   :  { %v7654_v24 = vpack.c.bf16 %v4207_v42, %v4204_v25  ;;  %v4330_v31 = vsub.f32 %v4328_v38, %v4329_v29  ;;  %v4342_v18 = vsub.f32 %v4183_v59, %v4204_v25  ;;  %v6183_v4 = vpack.c.bf16 %v4335_v12, %v4328_v38 }
 0x313   :  { %v4337_v43 = vsub.f32 %v4335_v12, %v4336_v55  ;;  %v4350_v34 = vand.u32 4294901760, %v4349_v60  ;;  %v6207_v22 = vpack.c.bf16 %v4308_v54, %v4301_v48  ;;  %v4324_v40 = vand.u32 4294901760, %v4323_v52 }
 0x314   :  { %6156 = vmatprep.subr.bf16.mxu1 %v7654_v24  ;;  %v4331_v57 = vand.u32 4294901760, %v4330_v31  ;;  %v4343_v21 = vand.u32 4294901760, %v4342_v18  ;;  %v6187_v53 = vpack.c.bf16 %v4349_v60, %v4342_v18  ;;  %v6211_v45 = vpack.c.bf16 %v4322_v23, %v4315_v30 }
 0x315   :  { %6158 = vmatpush3.bf16.msra.mxu1 %v7654_v24  ;;  %v4338_v9 = vand.u32 4294901760, %v4337_v43  ;;  %v4351_v17 = vsub.f32 %v4349_v60, %v4350_v34  ;;  %v6215_v16 = vpack.c.bf16 %v4336_v55, %v4329_v29  ;;  %v6163_v32 = vpack.c.bf16 %v4324_v40, %v4317_v56  ;;  %v2488_v29 = vpop.permute.xlu0 %2487 }
 0x316   :  { %6160 = vmatprep.subr.bf16.mxu1 %v6159_v2  ;;  %v4344_v50 = vsub.f32 %v4342_v18, %v4343_v21  ;;  %v6219_v59 = vpack.c.bf16 %v4350_v34, %v4343_v21  ;;  %v7744_v56 = vsub.s32 0, %v6586_v8 }
 0x317   :  { %v6167_v19 = vpack.c.bf16 %v4338_v9, %v4331_v57  ;;  %v4352_v42 = vand.u32 4294901760, %v4351_v17 }
 0x318   :  { %5836 = vmatmul.mubr.f32.vlgmr.msra.gmra.mrb[16].mxu1 %v7192_v14  ;;  %v4345_v48 = vand.u32 4294901760, %v4344_v50 }
 0x319   :  { %6162 = vmatpush3.bf16.msra.mxu1 %v6159_v2  ;;  %5838 = vmatprep.mubr.f32.mxu1 %v7199_v63 }
 0x31a   :  { %6164 = vmatprep.subr.bf16.mxu1 %v6163_v32  ;;  %v6171_v54 = vpack.c.bf16 %v4352_v42, %v4345_v48 }
 0x31c   :  { %5839 = vmatmul.mubr.f32.gmra.mrb[18].mxu1 %v7308_v11 }
 0x31d   :  { %6166 = vmatpush3.bf16.msra.mxu1 %v6163_v32  ;;  %5857 = vmatprep.mubr.f32.mxu1 %v6987_v35 }
 0x31e   :  { %6168 = vmatprep.subr.bf16.mxu1 %v6167_v19 }
 0x321   :  { %6170 = vmatpush3.bf16.msra.mxu1 %v6167_v19 }
 0x322   :  { %6172 = vmatprep.subr.bf16.mxu1 %v6171_v54 }
 0x325   :  { %6174 = vmatpush3.bf16.msra.mxu1 %v6171_v54 }
 0x326   :  { %6176 = vmatprep.subr.bf16.mxu1 %v6175_v58 }
 0x328   :  { %5858 = vmatmul.mubr.f32.vlgmr.msra.gmra.mrb[16].mxu1 %v7139_v5 }
 0x329   :  { %6178 = vmatpush3.bf16.msra.mxu1 %v6175_v58  ;;  %5860 = vmatprep.mubr.f32.mxu1 %v7141_v10 }
 0x32a   :  { %6180 = vmatprep.subr.bf16.mxu1 %v6179_v39 }
 0x32c   :  { %5861 = vmatmul.mubr.f32.gmra.mrb[18].mxu1 %v7149_v62 }
 0x32d   :  { %6182 = vmatpush3.bf16.msra.mxu1 %v6179_v39  ;;  %5879 = vmatprep.mubr.f32.mxu1 %v6990_v36 }
 0x32e   :  { %6184 = vmatprep.subr.bf16.mxu1 %v6183_v4 }
 0x331   :  { %6186 = vmatpush3.bf16.msra.mxu1 %v6183_v4 }
 0x332   :  { %6188 = vmatprep.subr.bf16.mxu1 %v6187_v53 }
 0x335   :  { %6190 = vmatpush3.bf16.msra.mxu1 %v6187_v53 }
 0x336   :  { %6192 = vmatprep.subr.bf16.mxu1 %v7615_v0 }
 0x338   :  { %5880 = vmatmul.mubr.f32.vlgmr.msra.gmra.mrb[16].mxu1 %v7147_v61 }
 0x339   :  { %6194 = vmatpush3.bf16.msra.mxu1 %v7615_v0  ;;  %5882 = vmatprep.mubr.f32.mxu1 %v7154_v27 }
 0x33a   :  { %6196 = vmatprep.subr.bf16.mxu1 %v7636_v26 }
 0x33c   :  { %5883 = vmatmul.mubr.f32.gmra.mrb[18].mxu1 %v7166_v13 }
 0x33d   :  { %6198 = vmatpush3.bf16.msra.mxu1 %v7636_v26  ;;  %5901 = vmatprep.mubr.f32.mxu1 %v6993_v44 }
 0x33e   :  { %6200 = vmatprep.subr.bf16.mxu1 %v7650_v28 }
 0x341   :  { %6202 = vmatpush3.bf16.msra.mxu1 %v7650_v28 }
 0x342   :  { %6204 = vmatprep.subr.bf16.mxu1 %v7654_v24 }
 0x345   :  { %6206 = vmatpush3.bf16.msra.mxu1 %v7654_v24 }
 0x346   :  { %6208 = vmatprep.subr.bf16.mxu1 %v6207_v22 }
 0x348   :  { %5902 = vmatmul.mubr.f32.vlgmr.msra.gmra.mrb[16].mxu1 %v7163_v6 }
 0x349   :  { %6210 = vmatpush3.bf16.msra.mxu1 %v6207_v22  ;;  %5904 = vmatprep.mubr.f32.mxu1 %v7169_v15 }
 0x34a   :  { %6212 = vmatprep.subr.bf16.mxu1 %v6211_v45 }
 0x34c   :  { %5905 = vmatmul.mubr.f32.gmra.mrb[18].mxu1 %v7180_v20 }
 0x34d   :  { %6214 = vmatpush3.bf16.msra.mxu1 %v6211_v45  ;;  %5923 = vmatprep.mubr.f32.mxu1 %v6987_v35 }
 0x34e   :  { %6216 = vmatprep.subr.bf16.mxu1 %v6215_v16 }
 0x351   :  { %6218 = vmatpush3.bf16.msra.mxu1 %v6215_v16 }
 0x352   :  { %6220 = vmatprep.subr.bf16.mxu1 %v6219_v59 }
 0x355   :  { %6222 = vmatpush3.bf16.msra.mxu1 %v6219_v59 }
 0x356   :  { %6224 = vmatprep.subr.bf16.mxu1 %v7615_v0 }
 0x358   :  { %5924 = vmatmul.mubr.f32.vlgmr.msra.gmra.mrb[16].mxu1 %v7139_v5 }
 0x359   :  { %6226 = vmatpush3.bf16.msra.mxu1 %v7615_v0  ;;  %5926 = vmatprep.mubr.f32.mxu1 %v7141_v10 }
 0x35a   :  { %6228 = vmatprep.subr.bf16.mxu1 %v7636_v26 }
 0x35c   :  { %5927 = vmatmul.mubr.f32.gmra.mrb[18].mxu1 %v7149_v62 }
 0x35d   :  { %6230 = vmatpush3.bf16.msra.mxu1 %v7636_v26  ;;  %5945 = vmatprep.mubr.f32.mxu1 %v6987_v35 }
 0x35e   :  { %6232 = vmatprep.subr.bf16.mxu1 %v7650_v28 }
 0x361   :  { %6234 = vmatpush3.bf16.msra.mxu1 %v7650_v28 }
 0x362   :  { %6236 = vmatprep.subr.bf16.mxu1 %v7654_v24 }
 0x365   :  { %6238 = vmatpush3.bf16.msra.mxu1 %v7654_v24 }
 0x368   :  { %5946 = vmatmul.mubr.f32.vlgmr.msra.gmra.mrb[16].mxu1 %v7139_v5 }
 0x369   :  { %5948 = vmatprep.mubr.f32.mxu1 %v7141_v10 }
 0x36c   :  { %5949 = vmatmul.mubr.f32.gmra.mrb[18].mxu1 %v7149_v62  ;;  %v2479_v62 = vrot.slane %v7562_v51, 4 }
 0x43b   :  { %v5947_v36 = vpop.f32.mrb[16].mxu1 }
 0x43c   :  { %v6243_v44 = vadd.f32 %v5947_v36, %v7538_v46  ;;  %v4829_v61 = vpop.f32.mrb[17].mxu1 }
 0x43d   :  { %v6244_v35 = vadd.f32 %v4829_v61, %v7534_v7 }
 0x43e   :  { %6491 = vtanh.f32 %v6243_v44 }
 0x43f   :  { %6493 = vtanh.f32 %v6244_v35  ;;  %v5950_v27 = vpop.f32.mrb[18].mxu1 }
 0x440   :  { %v6245_v6 = vadd.f32 %v5950_v27, %v7542_v33  ;;  %v4841_v13 = vpop.f32.mrb[19].mxu1  ;;  %v2480_v33 = vadd.f32 %v2479_v62, %v7562_v51 }
 0x441   :  { %v6246_v15 = vadd.f32 %v4841_v13, %v7536_v37 }
 0x442   :  { %6495 = vtanh.f32 %v6245_v6  ;;  %v2481_v28 = vrot.slane %v2480_v33, 2 }
 0x443   :  { %6497 = vtanh.f32 %v6246_v15 }
 0x444   :  { %v2482_v2 = vadd.f32 %v2481_v28, %v2480_v33 }
 0x446   :  { %v2483_v25 = vrot.slane %v2482_v2, 1 }
 0x448   :  { %v6492_v5 = vpop.eup %6491  ;;  %v2484_v51 = vadd.f32 %v2483_v25, %v2482_v2 }
 0x449   :  { %v6494_v10 = vpop.eup %6493  ;;  %v4856_v20 = vmul.f32 %v6492_v5, %v7546_v3 }
 0x44a   :  { %v4855_v14 = vmul.f32 %v6494_v10, %v7548_v1 }
 0x44b   :  { %v4860_v63 = vsel %vm2471_vm1, %v4856_v20, 0.0 }
 0x44c   :  { %v6496_v11 = vpop.eup %6495  ;;  %v4859_v7 = vsel %vm2471_vm1, %v4855_v14, 0.0 }
 0x44d   :  { %v6498_v46 = vpop.eup %6497  ;;  %v4861_v0 = vadd.f32 %v4860_v63, %v4859_v7  ;;  %v4858_v37 = vmul.f32 %v6496_v11, %v7553_v47  ;;  %v2493_v47 = vrot.slane %v2488_v29, %v7744_v56 }
 0x44e   :  { %v4857_v26 = vmul.f32 %v6498_v46, %v7555_v41 }
 0x44f   :  { %v4864_v3 = vsel %vm2471_vm1, %v4858_v37, 0.0  ;;  %v2494_v60 = vadd.f32 %v2493_v47, %v2484_v51 }
 0x450   :  { %v4862_v30 = vsel %vm2471_vm1, %v4857_v26, 0.0 }
 0x451   :  { %v4863_v38 = vadd.f32 %v4862_v30, %v4861_v0 }
 0x453   :  { %v4865_v1 = vadd.f32 %v4864_v3, %v4863_v38 }
 0x455   :  { %v4866_v49 = vrot.slane %v4865_v1, 4 }
 0x457   :  { %v4867_v12 = vadd.f32 %v4866_v49, %v4865_v1 }
 0x459   :  { %v4868_v23 = vrot.slane %v4867_v12, 2 }
 0x45b   :  { %v4869_v58 = vadd.f32 %v4868_v23, %v4867_v12 }
 0x45d   :  { %v4870_v55 = vrot.slane %v4869_v58, 1 }
 0x45f   :  { %v4871_v41 = vadd.f32 %v4870_v55, %v4869_v58 }
 0x461   :  { %v4872_v39 = vadd.f32 %v4871_v41, %v2493_v47 }
 0x463   :  { %v4874_v24 = vsel %vm4873_vm6, %v2494_v60, %v4872_v39 }
 0x464   :  { %v4875_v52 = vmul.f32 2.0, %v4874_v24 }
 0x466   :  { %v4877_v31 = vsel %vm4876_vm7, %v4875_v52, -inf }
 0x467   :  { %4878 = vmax.xlane.f32.xlu1 %v4877_v31 }
 0x4f4   :  { %v4879_v18 = vpop.xlane.xlu1 %4878 }
 0x4f5   :  { %v4880_v43 = vsub.f32 %v4875_v52, %v4879_v18 }
 0x4f7   :  { %v4881_v34 = vmul.f32 1.442695, %v4880_v43 }
 0x4f9   :  { %6499 = vpow2.f32 %v4881_v34 }
 0x503   :  { %v6500_v4 = vpop.eup %6499 }
 0x504   :  { %v4883_v22 = vsel %vm4876_vm7, %v6500_v4, 0.0 }
 0x505   :  { %4884 = vadd.xlane.f32.xlu0 %v4883_v22 }
 0x592   :  { %v4885_v8 = vpop.xlane.xlu0 %4884 }
 0x593   :  { %6501 = vrcp.f32 %v4885_v8 }
 0x59d   :  { %v6502_v40 = vpop.eup %6501 }
 0x59e   :  { %v4887_v57 = vmul.f32 %v6502_v40, %v6500_v4 }
 0x5a0   :  { %4888 = vst.msk [vmem:[#allocation3] sm:$0x3] %vm4876_vm7, %v4887_v57 }
 0x5a1   :  { %6514 = shalt.err (!%p6511_p4)
}
 0x5a2   :  { %s6515_s21 = scalar_lea.hbm %s7736_s8, 32 }
 0x5a3   :  { %p6516_p5 = scmp.ne.s32.totalorder %s7736_s8, %s6515_s21  ;;  %p6519_p6 = scmp.lt.u32.totalorder %s6515_s21, %s7736_s8 }
 0x5a5   :  { %p6521_p7 = pnand %p6519_p6, %p6516_p5 }
 0x5a7   :  { %6524 = shalt.err (!%p6521_p7)
}
 0x5a8   :  { %4898 = dma.vmem_to_hbm [thread:$0]  %s4896_s17, 32, %s7736_s8, [#allocation4]  }
 0x5a9   :  { %6525 = dma.done.wait [#allocation4], 32  }
 0x5aa   :  { %6526 = vsyncadd [#allocation4], 4294967264 }
 0x5ab   :  { %4902 = vsyncpa [#allocation4], 1 }

</bundles_post_ra>
